<compile_context>
chip_gen: v5e
topology: v5e:2x2
jax: 0.10.0
libtpu: 0.0.40
codegen_flags: <defaults>
</compile_context>

<pallas_src>
import functools

import jax
import jax.numpy as jnp
from jax import lax
from jax.experimental import pallas as pl
from jax.experimental.pallas import tpu as pltpu


# ----------------------------------------------------------------------------
# Per-chip VMEM capacity (used to size time chunks / vmem limits portably).
# ----------------------------------------------------------------------------
def _vmem_capacity_bytes():
    try:
        info = pltpu.get_tpu_info()
        cap = getattr(info, "vmem_capacity_bytes", None)
        if cap:
            return int(cap)
    except Exception:
        pass
    return 64 * 1024 * 1024  # conservative default (v7x per-core VMEM)


# ----------------------------------------------------------------------------
# Tiled matmul + bias kernel:  out[M, N] = x[M, K] @ w[K, N] + b[1, N]
# Used for (a) the hoisted LSTM input projection and (b) the vocab projection.
# ----------------------------------------------------------------------------
def _matmul_bias_kernel(x_ref, w_ref, b_ref, o_ref, acc_ref):
    k = pl.program_id(2)

    @pl.when(k == 0)
    def _():
        acc_ref[...] = jnp.zeros_like(acc_ref)

    acc_ref[...] += jnp.dot(x_ref[...], w_ref[...],
                            preferred_element_type=jnp.float32)

    @pl.when(k == pl.num_programs(2) - 1)
    def _():
        o_ref[...] = (acc_ref[...] + b_ref[...]).astype(o_ref.dtype)


def _pick_reduction_tile(K, cap=512):
    """Largest 128-multiple divisor of K <= cap, else full K (keeps the f32
    accumulator free of padded-block garbage and the lane dim aligned)."""
    if K <= cap:
        return K
    for tk in range(cap, 127, -128):
        if K % tk == 0:
            return tk
    return K


def matmul_bias_pallas(x, w_t, b, *, out_dtype=jnp.float32,
                       tm=512, tn=256, tk=512):
    """x: [M, K] (bf16/f32), w_t: [K, N], b: [1, N] f32 -> [M, N] out_dtype."""
    M, K = x.shape
    _, N = w_t.shape
    tm = min(tm, M)
    tn = min(tn, N)
    tk = _pick_reduction_tile(K, tk)
    grid = (pl.cdiv(M, tm), pl.cdiv(N, tn), K // tk)

    flops = 2 * M * N * K
    bytes_accessed = (M * K * x.dtype.itemsize + K * N * w_t.dtype.itemsize
                      + b.size * b.dtype.itemsize
                      + M * N * jnp.dtype(out_dtype).itemsize)

    return pl.pallas_call(
        _matmul_bias_kernel,
        out_shape=jax.ShapeDtypeStruct((M, N), out_dtype),
        grid_spec=pltpu.PrefetchScalarGridSpec(
            num_scalar_prefetch=0,
            grid=grid,
            in_specs=[
                pl.BlockSpec((tm, tk), lambda i, j, k: (i, k)),   # x tile
                pl.BlockSpec((tk, tn), lambda i, j, k: (k, j)),   # w tile
                pl.BlockSpec((1, tn), lambda i, j, k: (0, j)),    # bias tile
            ],
            out_specs=pl.BlockSpec((tm, tn), lambda i, j, k: (i, j)),
            scratch_shapes=[pltpu.VMEM((tm, tn), jnp.float32)],
        ),
        compiler_params=pltpu.CompilerParams(
            dimension_semantics=("parallel", "parallel", "arbitrary")),
        # Advisory cost so XLA can overlap this matmul with the (latency-bound)
        # recurrent kernel of the previous layer.
        cost_estimate=pl.CostEstimate(flops=flops, transcendentals=0,
                                      bytes_accessed=bytes_accessed),
    )(x, w_t, b)


# ----------------------------------------------------------------------------
# Recurrent LSTM kernel: gates_x (precomputed x@W_ih + b, bf16) are consumed in
# time chunks; only h @ W_hh runs inside the sequential loop. h/c live in VMEM
# scratch across chunks. Gate column order is (i, f, o, g).
# Grid = (batch blocks ["parallel", megacore], time chunks ["arbitrary"]).
# ----------------------------------------------------------------------------
def _lstm_recurrent_kernel(t_valid, t_chunk, unroll,
                           gx_ref, whh_ref, h0_ref, c0_ref,
                           y_ref, hT_ref, cT_ref, h_sc, c_sc):
    H = h_sc.shape[-1]
    Tc = t_chunk
    tb = pl.program_id(1)
    needs_mask = (t_valid % Tc) != 0          # padded tail timesteps exist

    @pl.when(tb == 0)
    def _():
        h_sc[...] = h0_ref[...]
        c_sc[...] = c0_ref[...]

    whh = whh_ref[...]                        # [H, 4H] bf16, loaded once
    base = tb * Tc

    def step(t, carry):
        h, c = carry                          # f32 [Bc, H]
        gates = gx_ref[t].astype(jnp.float32) + jnp.dot(
            h.astype(whh.dtype), whh, preferred_element_type=jnp.float32)
        ifo = jax.nn.sigmoid(gates[:, :3 * H])            # one sigmoid over [Bc, 3H]
        g = jnp.tanh(gates[:, 3 * H:])                    # one tanh over [Bc, H]
        i = ifo[:, 0 * H:1 * H]
        f = ifo[:, 1 * H:2 * H]
        o = ifo[:, 2 * H:3 * H]
        c_new = f * c + i * g
        h_new = o * jnp.tanh(c_new)
        y_ref[t] = h_new.astype(y_ref.dtype)
        if needs_mask:                        # keep carry frozen on padded steps
            valid = (base + t) < t_valid
            h_new = jnp.where(valid, h_new, h)
            c_new = jnp.where(valid, c_new, c)
        return (h_new, c_new)

    h_fin, c_fin = lax.fori_loop(0, Tc, step, (h_sc[...], c_sc[...]),
                                 unroll=unroll)
    h_sc[...] = h_fin
    c_sc[...] = c_fin

    @pl.when(tb == pl.num_programs(1) - 1)
    def _():
        hT_ref[...] = h_fin
        cT_ref[...] = c_fin


def _choose_batch_block(Bp):
    # Split the batch across the two TensorCores (v7x megacore) when it is large
    # enough to keep each block sublane-aligned; single block otherwise.
    if Bp >= 16 and Bp % 16 == 0:
        return Bp // 2
    return Bp


def _choose_time_chunk(T, Bc, H, cap_steps=512):
    """Largest Tc whose pipelined VMEM footprint fits ~1/3 of per-chip VMEM."""
    budget = _vmem_capacity_bytes() // 3
    fixed = (H * 4 * H * 2            # W_hh, single-buffered (Buffered(1))
             + 2 * 2 * Bc * H * 4     # h0 + c0 (double-buffered)
             + 2 * 2 * Bc * H * 4     # hT + cT outputs
             + 2 * Bc * H * 4)        # h/c scratch
    per_step = 2 * Bc * 4 * H * 2 + 2 * Bc * H * 2   # double-buffered gx + y (bf16)
    avail = max(budget - fixed, per_step)
    return int(max(1, min(T, cap_steps, avail // per_step)))


def _recurrent_vmem_bytes(Tc, Bc, H):
    return (2 * Tc * Bc * 4 * H * 2 + 2 * Tc * Bc * H * 2
            + H * 4 * H * 2 + 2 * 2 * Bc * H * 4
            + 2 * 2 * Bc * H * 4 + 2 * Bc * H * 4)


def lstm_recurrent_pallas(gates_x_tbh, w_hh_t, h0, c0):
    """gates_x_tbh: [T, Bp, 4H] bf16 -> (y [T, Bp, H] bf16, hT/cT [Bp, H] f32)."""
    T, Bp, G = gates_x_tbh.shape
    H = h0.shape[-1]

    Bc = _choose_batch_block(Bp)
    Tc = _choose_time_chunk(T, Bc, H)
    T_pad = ((T + Tc - 1) // Tc) * Tc
    if T_pad != T:
        gates_x_tbh = jnp.pad(gates_x_tbh, ((0, T_pad - T), (0, 0), (0, 0)))

    unroll = Tc if Tc <= 8 else 4
    kernel = functools.partial(_lstm_recurrent_kernel, T, Tc, unroll)

    need = _recurrent_vmem_bytes(Tc, Bc, H)
    vmem_limit = int(min(_vmem_capacity_bytes(),
                         max(2 * need, 32 * 1024 * 1024)))

    grid_spec = pltpu.PrefetchScalarGridSpec(
        num_scalar_prefetch=0,
        grid=(Bp // Bc, T_pad // Tc),
        in_specs=[
            pl.BlockSpec((Tc, Bc, G), lambda b, t: (t, b, 0)),   # gate chunk (bf16)
            pl.BlockSpec((H, G), lambda b, t: (0, 0),
                         pipeline_mode=pl.Buffered(1)),          # W_hh: fetched once
            pl.BlockSpec((Bc, H), lambda b, t: (b, 0)),          # h0 (varies with b)
            pl.BlockSpec((Bc, H), lambda b, t: (b, 0)),          # c0
        ],
        out_specs=[
            pl.BlockSpec((Tc, Bc, H), lambda b, t: (t, b, 0)),   # y chunk
            pl.BlockSpec((Bc, H), lambda b, t: (b, 0)),          # hT
            pl.BlockSpec((Bc, H), lambda b, t: (b, 0)),          # cT
        ],
        scratch_shapes=[pltpu.VMEM((Bc, H), jnp.float32),
                        pltpu.VMEM((Bc, H), jnp.float32)],
    )

    y, hT, cT = pl.pallas_call(
        kernel,
        out_shape=(jax.ShapeDtypeStruct((T_pad, Bp, H), jnp.bfloat16),
                   jax.ShapeDtypeStruct((Bp, H), jnp.float32),
                   jax.ShapeDtypeStruct((Bp, H), jnp.float32)),
        grid_spec=grid_spec,
        compiler_params=pltpu.CompilerParams(
            dimension_semantics=("parallel", "arbitrary"),
            vmem_limit_bytes=vmem_limit),
    )(gates_x_tbh, w_hh_t, h0, c0)

    if T_pad != T:
        y = y[:T]
    return y, hT, cT


# ----------------------------------------------------------------------------
# Full forward: embedding gather (XLA glue) -> per layer: batched gate projection
# kernel + recurrent kernel (time-major throughout) -> tiled output projection.
# ----------------------------------------------------------------------------
def text_generation_forward(params, tokens, hidden_state=None):
    B, T = tokens.shape
    H = params["embedding"].shape[1]
    L = len(params["lstm"])
    B_pad = ((B + 7) // 8) * 8            # sublane-align the batch dim

    # TODO(synk): embedding row-gather stays as jnp.take (data-dependent gather).
    if B_pad != B:
        tokens = jnp.pad(tokens, ((0, B_pad - B), (0, 0)))
    emb = jnp.take(params["embedding"], tokens, axis=0)          # [Bp, T, H] bf16

    if hidden_state is None:
        h0 = jnp.zeros((L, B_pad, H), jnp.float32)
        c0 = jnp.zeros((L, B_pad, H), jnp.float32)
    else:
        h0, c0 = hidden_state
        if h0.shape[1] != B_pad:
            pad = ((0, 0), (0, B_pad - h0.shape[1]), (0, 0))
            h0 = jnp.pad(h0, pad)
            c0 = jnp.pad(c0, pad)

    # TODO(synk): the hidden size is not padded to a lane multiple here; realistic
    # configs (H=256) are already 128-aligned, the tiny demo (H=32) is not.
    x = jnp.swapaxes(emb, 0, 1)                                  # [T, Bp, H] once
    h_list, c_list = [], []
    for l, lp in enumerate(params["lstm"]):
        H_in = x.shape[-1]
        # Hoisted input projection: one big [T*Bp, H_in] @ [H_in, 4H] matmul,
        # stored in bf16 to halve the HBM round trip of the gate pre-activations.
        gx = matmul_bias_pallas(x.reshape(T * B_pad, H_in), lp["w_ih_t"], lp["b"],
                                out_dtype=jnp.bfloat16)
        gx = gx.reshape(T, B_pad, 4 * H)
        x, hT, cT = lstm_recurrent_pallas(gx, lp["w_hh_t"], h0[l], c0[l])
        h_list.append(hT[:B])
        c_list.append(cT[:B])

    # Output projection with a lane-dense (128-multiple) vocab dimension.
    V = params["w_out_t"].shape[1]
    V_pad = ((V + 127) // 128) * 128
    w_out_t, b_out = params["w_out_t"], params["b_out"]
    if V_pad != V:
        w_out_t = jnp.pad(w_out_t, ((0, 0), (0, V_pad - V)))
        b_out = jnp.pad(b_out, ((0, 0), (0, V_pad - V)))
    logits = matmul_bias_pallas(x.reshape(T * B_pad, H), w_out_t, b_out,
                                out_dtype=jnp.float32)           # [T*Bp, Vp] f32
    out = jnp.swapaxes(logits.reshape(T, B_pad, V_pad), 0, 1)[:B, :, :V]
    return out, (jnp.stack(h_list), jnp.stack(c_list))


# ----------------------------------------------------------------------------
# Deterministic parameter construction (mirrors the module's __init__ shapes).
# Gate columns are packed in (i, f, o, g) order; since the init is random this
# permutation does not change the module's semantics.
# ----------------------------------------------------------------------------
def make_params(vocab_size, hidden, num_layers, key):
    keys = jax.random.split(key, 3 + 2 * num_layers)
    params = {
        "embedding": jax.random.normal(keys[0], (vocab_size, hidden),
                                       jnp.float32).astype(jnp.bfloat16),
    }
    lstm_params = []
    for l in range(num_layers):
        in_size = hidden
        k_ih, k_hh = keys[3 + 2 * l], keys[4 + 2 * l]
        # kaiming_normal_ for weight_ih: std = sqrt(2 / fan_in)
        w_ih = jax.random.normal(k_ih, (4 * hidden, in_size), jnp.float32) * \
            jnp.sqrt(2.0 / in_size)
        # orthogonal_ for weight_hh via QR of a normal matrix
        a = jax.random.normal(k_hh, (4 * hidden, hidden), jnp.float32)
        w_hh, _ = jnp.linalg.qr(a)
        lstm_params.append({
            "w_ih_t": w_ih.T.astype(jnp.bfloat16),               # [H_in, 4H]
            "w_hh_t": w_hh.T.astype(jnp.bfloat16),               # [H, 4H]
            # bias_ih + bias_hh, both constant 0.0 in the module
            "b": jnp.zeros((1, 4 * hidden), jnp.float32),
        })
    params["lstm"] = lstm_params
    # linear: kaiming_normal_ weight; default (untouched) bias ~ U(-1/sqrt(H), 1/sqrt(H))
    w_out = jax.random.normal(keys[1], (vocab_size, hidden), jnp.float32) * \
        jnp.sqrt(2.0 / hidden)
    params["w_out_t"] = w_out.T.astype(jnp.bfloat16)             # [H, V]
    bound = 1.0 / jnp.sqrt(jnp.float32(hidden))
    params["b_out"] = jax.random.uniform(keys[2], (1, vocab_size), jnp.float32,
                                         -bound, bound)
    return params


# ----------------------------------------------------------------------------
# Pure-JAX reference (same bf16/f32 mixed precision, incl. bf16 gate pre-acts).
# ----------------------------------------------------------------------------
def _ref_lstm_layer(x_bth, w_ih_t, w_hh_t, b, h0, c0):
    B, T, H_in = x_bth.shape
    H = h0.shape[-1]
    gx = (jnp.dot(x_bth.reshape(B * T, H_in), w_ih_t,
                  preferred_element_type=jnp.float32) + b)
    gx = gx.astype(jnp.bfloat16).astype(jnp.float32).reshape(B, T, 4 * H)
    gx_tb = jnp.swapaxes(gx, 0, 1)                               # [T, B, 4H]

    def step(carry, gx_t):
        h, c = carry
        gates = gx_t + jnp.dot(h.astype(w_hh_t.dtype), w_hh_t,
                               preferred_element_type=jnp.float32)
        ifo = jax.nn.sigmoid(gates[:, :3 * H])
        g = jnp.tanh(gates[:, 3 * H:])
        i, f, o = ifo[:, :H], ifo[:, H:2 * H], ifo[:, 2 * H:]
        c = f * c + i * g
        h = o * jnp.tanh(c)
        return (h, c), h.astype(jnp.bfloat16)

    (hT, cT), ys = lax.scan(step, (h0, c0), gx_tb)
    return jnp.swapaxes(ys, 0, 1), hT, cT


def _ref_forward(params, tokens):
    emb = jnp.take(params["embedding"], tokens, axis=0)
    B, T, H = emb.shape
    x = emb
    hs, cs = [], []
    for lp in params["lstm"]:
        x, hT, cT = _ref_lstm_layer(x, lp["w_ih_t"], lp["w_hh_t"], lp["b"],
                                    jnp.zeros((B, H), jnp.float32),
                                    jnp.zeros((B, H), jnp.float32))
        hs.append(hT)
        cs.append(cT)
    out = (jnp.dot(x.reshape(B * T, H), params["w_out_t"],
                   preferred_element_type=jnp.float32)
           + params["b_out"]).reshape(B, T, -1)
    return out, (jnp.stack(hs), jnp.stack(cs))


if __name__ == "__main__":
    batch_size = 2
    seq_length = 8
    vocabulary_size = 32
    lstm_num_hidden = 32
    lstm_num_layers = 2

    key = jax.random.PRNGKey(0)
    k_param, k_tok = jax.random.split(key)
    params = make_params(vocabulary_size, lstm_num_hidden, lstm_num_layers, k_param)
    tokens = jax.random.randint(k_tok, (batch_size, seq_length), 0, vocabulary_size,
                                dtype=jnp.int32)

    fwd = jax.jit(text_generation_forward)
    out, (h_n, c_n) = fwd(params, tokens)
    out = jax.block_until_ready(out)
    h_n = jax.block_until_ready(h_n)
    c_n = jax.block_until_ready(c_n)

    # correctness check against a pure-JAX reference with matching precision
    ref_out, (ref_h, ref_c) = _ref_forward(params, tokens)
    assert out.shape == (batch_size, seq_length, vocabulary_size)
    assert h_n.shape == (lstm_num_layers, batch_size, lstm_num_hidden)
    assert c_n.shape == (lstm_num_layers, batch_size, lstm_num_hidden)
    assert jnp.allclose(out, ref_out, atol=2e-2, rtol=2e-2)
    assert jnp.allclose(h_n, ref_h, atol=2e-2, rtol=2e-2)
    assert jnp.allclose(c_n, ref_c, atol=2e-2, rtol=2e-2)

    print("KERNEL_OK")
</pallas_src>

<mosaic_0001>
module attributes {stable_mosaic.version = 11 : i64} {
  func.func @_matmul_bias_kernel(%arg0: i32, %arg1: i32, %arg2: i32, %arg3: memref<64x32xbf16, #tpu.memory_space<vmem>>, %arg4: memref<32x128xbf16, #tpu.memory_space<vmem>>, %arg5: memref<1x128xf32, #tpu.memory_space<vmem>>, %arg6: memref<64x128xbf16, #tpu.memory_space<vmem>>, %arg7: memref<64x128xf32, #tpu.memory_space<vmem>>) attributes {dimension_semantics = [#tpu.dimension_semantics<parallel>, #tpu.dimension_semantics<parallel>, #tpu.dimension_semantics<arbitrary>], iteration_bounds = array<i64: 1, 1, 1>, scalar_prefetch = 0 : i64, scratch_operands = 1 : i64, tpu.core_type = #tpu.core_type<tc>, window_params = [{transform_indices = @transform_0, window_bounds = array<i64: 64, 32>}, {transform_indices = @transform_1, window_bounds = array<i64: 32, 128>}, {transform_indices = @transform_2, window_bounds = array<i64: 1, 128>}, {transform_indices = @transform_3, window_bounds = array<i64: 64, 128>}]} {
    %c0_i32 = arith.constant 0 : i32
    %0 = arith.cmpi eq, %arg2, %c0_i32 : i32
    %1 = arith.extui %0 : i1 to i32
    %c0_i32_0 = arith.constant 0 : i32
    %2 = arith.cmpi ne, %1, %c0_i32_0 : i32
    scf.if %2 {
      %cst_10 = arith.constant 0.000000e+00 : f32
      %12 = vector.broadcast %cst_10 : f32 to vector<64x128xf32>
      %c0_11 = arith.constant 0 : index
      %c0_12 = arith.constant 0 : index
      %13 = vector.load %arg7[%c0_11, %c0_12] : memref<64x128xf32, #tpu.memory_space<vmem>>, vector<64x128xf32>
      tpu.vector_store %arg7[%c0_11, %c0_12], %12 {strides = array<i32>} : memref<64x128xf32, #tpu.memory_space<vmem>>, vector<64x128xf32>,
    } else {
    }
    %c0 = arith.constant 0 : index
    %c0_1 = arith.constant 0 : index
    %3 = vector.load %arg7[%c0, %c0_1] : memref<64x128xf32, #tpu.memory_space<vmem>>, vector<64x128xf32>
    %c0_2 = arith.constant 0 : index
    %c0_3 = arith.constant 0 : index
    %4 = vector.load %arg3[%c0_2, %c0_3] : memref<64x32xbf16, #tpu.memory_space<vmem>>, vector<64x32xbf16>
    %c0_4 = arith.constant 0 : index
    %c0_5 = arith.constant 0 : index
    %5 = vector.load %arg4[%c0_4, %c0_5] : memref<32x128xbf16, #tpu.memory_space<vmem>>, vector<32x128xbf16>
    %cst = arith.constant dense<0.000000e+00> : vector<64x128xf32>
    %6 = tpu.matmul %4, %5, %cst {dimension_numbers = #tpu.dot_dimension_numbers<[1], [0], [0], [1], [0, 0, 1, 1], [], []>} : vector<64x32xbf16>, vector<32x128xbf16>, vector<64x128xf32> -> vector<64x128xf32>
    %7 = arith.addf %3, %6 : vector<64x128xf32>
    %c0_6 = arith.constant 0 : index
    %c0_7 = arith.constant 0 : index
    %8 = vector.load %arg7[%c0_6, %c0_7] : memref<64x128xf32, #tpu.memory_space<vmem>>, vector<64x128xf32>
    tpu.vector_store %arg7[%c0_6, %c0_7], %7 {strides = array<i32>} : memref<64x128xf32, #tpu.memory_space<vmem>>, vector<64x128xf32>,
    %c0_i32_8 = arith.constant 0 : i32
    %9 = arith.cmpi eq, %arg2, %c0_i32_8 : i32
    %10 = arith.extui %9 : i1 to i32
    %c0_i32_9 = arith.constant 0 : i32
    %11 = arith.cmpi ne, %10, %c0_i32_9 : i32
    scf.if %11 {
      %c0_10 = arith.constant 0 : index
      %c0_11 = arith.constant 0 : index
      %12 = vector.load %arg7[%c0_10, %c0_11] : memref<64x128xf32, #tpu.memory_space<vmem>>, vector<64x128xf32>
      %c0_12 = arith.constant 0 : index
      %c0_13 = arith.constant 0 : index
      %13 = vector.load %arg5[%c0_12, %c0_13] : memref<1x128xf32, #tpu.memory_space<vmem>>, vector<1x128xf32>
      %14 = vector.broadcast %13 : vector<1x128xf32> to vector<64x128xf32>
      %15 = arith.addf %12, %14 : vector<64x128xf32>
      %16 = arith.truncf %15 : vector<64x128xf32> to vector<64x128xbf16>
      %c0_14 = arith.constant 0 : index
      %c0_15 = arith.constant 0 : index
      %17 = vector.load %arg6[%c0_14, %c0_15] : memref<64x128xbf16, #tpu.memory_space<vmem>>, vector<64x128xbf16>
      tpu.vector_store %arg6[%c0_14, %c0_15], %16 {strides = array<i32>} : memref<64x128xbf16, #tpu.memory_space<vmem>>, vector<64x128xbf16>,
    } else {
    }
    return
  }
  func.func @transform_0(%arg0: i32, %arg1: i32, %arg2: i32) -> (i32, i32) {
    %c0_i32 = arith.constant 0 : i32
    return %arg0, %arg2 : i32, i32
  }
  func.func @transform_1(%arg0: i32, %arg1: i32, %arg2: i32) -> (i32, i32) {
    %c0_i32 = arith.constant 0 : i32
    return %arg2, %arg1 : i32, i32
  }
  func.func @transform_2(%arg0: i32, %arg1: i32, %arg2: i32) -> (i32, i32) {
    %c0_i32 = arith.constant 0 : i32
    %c0_i32_0 = arith.constant 0 : i32
    return %c0_i32, %arg1 : i32, i32
  }
  func.func @transform_3(%arg0: i32, %arg1: i32, %arg2: i32) -> (i32, i32) {
    %c0_i32 = arith.constant 0 : i32
    return %arg0, %arg1 : i32, i32
  }
}

module attributes {stable_mosaic.version = 11 : i64} {
  func.func @_matmul_bias_kernel(%arg0: i32, %arg1: i32, %arg2: i32, %arg3: memref<64x32xbf16, #tpu.memory_space<vmem>>, %arg4: memref<32x128xbf16, #tpu.memory_space<vmem>>, %arg5: memref<1x128xf32, #tpu.memory_space<vmem>>, %arg6: memref<64x128xf32, #tpu.memory_space<vmem>>, %arg7: memref<64x128xf32, #tpu.memory_space<vmem>>) attributes {dimension_semantics = [#tpu.dimension_semantics<parallel>, #tpu.dimension_semantics<parallel>, #tpu.dimension_semantics<arbitrary>], iteration_bounds = array<i64: 1, 1, 1>, scalar_prefetch = 0 : i64, scratch_operands = 1 : i64, tpu.core_type = #tpu.core_type<tc>, window_params = [{transform_indices = @transform_0, window_bounds = array<i64: 64, 32>}, {transform_indices = @transform_1, window_bounds = array<i64: 32, 128>}, {transform_indices = @transform_2, window_bounds = array<i64: 1, 128>}, {transform_indices = @transform_3, window_bounds = array<i64: 64, 128>}]} {
    %c0_i32 = arith.constant 0 : i32
    %0 = arith.cmpi eq, %arg2, %c0_i32 : i32
    %1 = arith.extui %0 : i1 to i32
    %c0_i32_0 = arith.constant 0 : i32
    %2 = arith.cmpi ne, %1, %c0_i32_0 : i32
    scf.if %2 {
      %cst_10 = arith.constant 0.000000e+00 : f32
      %12 = vector.broadcast %cst_10 : f32 to vector<64x128xf32>
      %c0_11 = arith.constant 0 : index
      %c0_12 = arith.constant 0 : index
      %13 = vector.load %arg7[%c0_11, %c0_12] : memref<64x128xf32, #tpu.memory_space<vmem>>, vector<64x128xf32>
      tpu.vector_store %arg7[%c0_11, %c0_12], %12 {strides = array<i32>} : memref<64x128xf32, #tpu.memory_space<vmem>>, vector<64x128xf32>,
    } else {
    }
    %c0 = arith.constant 0 : index
    %c0_1 = arith.constant 0 : index
    %3 = vector.load %arg7[%c0, %c0_1] : memref<64x128xf32, #tpu.memory_space<vmem>>, vector<64x128xf32>
    %c0_2 = arith.constant 0 : index
    %c0_3 = arith.constant 0 : index
    %4 = vector.load %arg3[%c0_2, %c0_3] : memref<64x32xbf16, #tpu.memory_space<vmem>>, vector<64x32xbf16>
    %c0_4 = arith.constant 0 : index
    %c0_5 = arith.constant 0 : index
    %5 = vector.load %arg4[%c0_4, %c0_5] : memref<32x128xbf16, #tpu.memory_space<vmem>>, vector<32x128xbf16>
    %cst = arith.constant dense<0.000000e+00> : vector<64x128xf32>
    %6 = tpu.matmul %4, %5, %cst {dimension_numbers = #tpu.dot_dimension_numbers<[1], [0], [0], [1], [0, 0, 1, 1], [], []>} : vector<64x32xbf16>, vector<32x128xbf16>, vector<64x128xf32> -> vector<64x128xf32>
    %7 = arith.addf %3, %6 : vector<64x128xf32>
    %c0_6 = arith.constant 0 : index
    %c0_7 = arith.constant 0 : index
    %8 = vector.load %arg7[%c0_6, %c0_7] : memref<64x128xf32, #tpu.memory_space<vmem>>, vector<64x128xf32>
    tpu.vector_store %arg7[%c0_6, %c0_7], %7 {strides = array<i32>} : memref<64x128xf32, #tpu.memory_space<vmem>>, vector<64x128xf32>,
    %c0_i32_8 = arith.constant 0 : i32
    %9 = arith.cmpi eq, %arg2, %c0_i32_8 : i32
    %10 = arith.extui %9 : i1 to i32
    %c0_i32_9 = arith.constant 0 : i32
    %11 = arith.cmpi ne, %10, %c0_i32_9 : i32
    scf.if %11 {
      %c0_10 = arith.constant 0 : index
      %c0_11 = arith.constant 0 : index
      %12 = vector.load %arg7[%c0_10, %c0_11] : memref<64x128xf32, #tpu.memory_space<vmem>>, vector<64x128xf32>
      %c0_12 = arith.constant 0 : index
      %c0_13 = arith.constant 0 : index
      %13 = vector.load %arg5[%c0_12, %c0_13] : memref<1x128xf32, #tpu.memory_space<vmem>>, vector<1x128xf32>
      %14 = vector.broadcast %13 : vector<1x128xf32> to vector<64x128xf32>
      %15 = arith.addf %12, %14 : vector<64x128xf32>
      %c0_14 = arith.constant 0 : index
      %c0_15 = arith.constant 0 : index
      %16 = vector.load %arg6[%c0_14, %c0_15] : memref<64x128xf32, #tpu.memory_space<vmem>>, vector<64x128xf32>
      tpu.vector_store %arg6[%c0_14, %c0_15], %15 {strides = array<i32>} : memref<64x128xf32, #tpu.memory_space<vmem>>, vector<64x128xf32>,
    } else {
    }
    return
  }
  func.func @transform_0(%arg0: i32, %arg1: i32, %arg2: i32) -> (i32, i32) {
    %c0_i32 = arith.constant 0 : i32
    return %arg0, %arg2 : i32, i32
  }
  func.func @transform_1(%arg0: i32, %arg1: i32, %arg2: i32) -> (i32, i32) {
    %c0_i32 = arith.constant 0 : i32
    return %arg2, %arg1 : i32, i32
  }
  func.func @transform_2(%arg0: i32, %arg1: i32, %arg2: i32) -> (i32, i32) {
    %c0_i32 = arith.constant 0 : i32
    %c0_i32_0 = arith.constant 0 : i32
    return %c0_i32, %arg1 : i32, i32
  }
  func.func @transform_3(%arg0: i32, %arg1: i32, %arg2: i32) -> (i32, i32) {
    %c0_i32 = arith.constant 0 : i32
    return %arg0, %arg1 : i32, i32
  }
}

module attributes {stable_mosaic.version = 11 : i64} {
  func.func @_lstm_recurrent_kernel(%arg0: i32, %arg1: i32, %arg2: memref<8x8x128xbf16, #tpu.memory_space<vmem>>, %arg3: memref<32x128xbf16, #tpu.memory_space<vmem>>, %arg4: memref<8x32xf32, #tpu.memory_space<vmem>>, %arg5: memref<8x32xf32, #tpu.memory_space<vmem>>, %arg6: memref<8x8x32xbf16, #tpu.memory_space<vmem>>, %arg7: memref<8x32xf32, #tpu.memory_space<vmem>>, %arg8: memref<8x32xf32, #tpu.memory_space<vmem>>, %arg9: memref<8x32xf32, #tpu.memory_space<vmem>>, %arg10: memref<8x32xf32, #tpu.memory_space<vmem>>) attributes {dimension_semantics = [#tpu.dimension_semantics<parallel>, #tpu.dimension_semantics<arbitrary>], iteration_bounds = array<i64: 1, 1>, scalar_prefetch = 0 : i64, scratch_operands = 2 : i64, tpu.core_type = #tpu.core_type<tc>, window_params = [{transform_indices = @transform_0, window_bounds = array<i64: 8, 8, 128>}, {pipeline_mode = #tpu.pipeline_mode<synchronous>, transform_indices = @transform_1, window_bounds = array<i64: 32, 128>}, {transform_indices = @transform_2, window_bounds = array<i64: 8, 32>}, {transform_indices = @transform_3, window_bounds = array<i64: 8, 32>}, {transform_indices = @transform_4, window_bounds = array<i64: 8, 8, 32>}, {transform_indices = @transform_5, window_bounds = array<i64: 8, 32>}, {transform_indices = @transform_6, window_bounds = array<i64: 8, 32>}]} {
    %c0_i32 = arith.constant 0 : i32
    %0 = arith.cmpi eq, %arg1, %c0_i32 : i32
    %1 = arith.extui %0 : i1 to i32
    %c0_i32_0 = arith.constant 0 : i32
    %2 = arith.cmpi ne, %1, %c0_i32_0 : i32
    scf.if %2 {
      %c0_60 = arith.constant 0 : index
      %c0_61 = arith.constant 0 : index
      %235 = vector.load %arg4[%c0_60, %c0_61] : memref<8x32xf32, #tpu.memory_space<vmem>>, vector<8x32xf32>
      %c0_62 = arith.constant 0 : index
      %c0_63 = arith.constant 0 : index
      %236 = vector.load %arg9[%c0_62, %c0_63] : memref<8x32xf32, #tpu.memory_space<vmem>>, vector<8x32xf32>
      tpu.vector_store %arg9[%c0_62, %c0_63], %235 {strides = array<i32>} : memref<8x32xf32, #tpu.memory_space<vmem>>, vector<8x32xf32>,
      %c0_64 = arith.constant 0 : index
      %c0_65 = arith.constant 0 : index
      %237 = vector.load %arg5[%c0_64, %c0_65] : memref<8x32xf32, #tpu.memory_space<vmem>>, vector<8x32xf32>
      %c0_66 = arith.constant 0 : index
      %c0_67 = arith.constant 0 : index
      %238 = vector.load %arg10[%c0_66, %c0_67] : memref<8x32xf32, #tpu.memory_space<vmem>>, vector<8x32xf32>
      tpu.vector_store %arg10[%c0_66, %c0_67], %237 {strides = array<i32>} : memref<8x32xf32, #tpu.memory_space<vmem>>, vector<8x32xf32>,
    } else {
    }
    %c0 = arith.constant 0 : index
    %c0_1 = arith.constant 0 : index
    %3 = vector.load %arg3[%c0, %c0_1] : memref<32x128xbf16, #tpu.memory_space<vmem>>, vector<32x128xbf16>
    %c0_2 = arith.constant 0 : index
    %c0_3 = arith.constant 0 : index
    %4 = vector.load %arg9[%c0_2, %c0_3] : memref<8x32xf32, #tpu.memory_space<vmem>>, vector<8x32xf32>
    %c0_4 = arith.constant 0 : index
    %c0_5 = arith.constant 0 : index
    %5 = vector.load %arg10[%c0_4, %c0_5] : memref<8x32xf32, #tpu.memory_space<vmem>>, vector<8x32xf32>
    %c0_i32_6 = arith.constant 0 : i32
    %6 = arith.index_cast %c0_i32_6 : i32 to index
    %c0_7 = arith.constant 0 : index
    %c0_8 = arith.constant 0 : index
    %7 = vector.load %arg2[%6, %c0_7, %c0_8] : memref<8x8x128xbf16, #tpu.memory_space<vmem>>, vector<1x8x128xbf16>
    %8 = vector.shape_cast %7 : vector<1x8x128xbf16> to vector<8x128xbf16>
    %9 = arith.extf %8 : vector<8x128xbf16> to vector<8x128xf32>
    %10 = arith.truncf %4 : vector<8x32xf32> to vector<8x32xbf16>
    %cst = arith.constant dense<0.000000e+00> : vector<8x128xf32>
    %11 = tpu.matmul %10, %3, %cst {dimension_numbers = #tpu.dot_dimension_numbers<[1], [0], [0], [1], [0, 0, 1, 1], [], []>} : vector<8x32xbf16>, vector<32x128xbf16>, vector<8x128xf32> -> vector<8x128xf32>
    %12 = arith.addf %9, %11 : vector<8x128xf32>
    %13 = vector.extract_strided_slice %12 {offsets = [0, 0], sizes = [8, 96], strides = [1, 1]} : vector<8x128xf32> to vector<8x96xf32>
    %14 = arith.negf %13 : vector<8x96xf32>
    %15 = math.exp %14 : vector<8x96xf32>
    %cst_9 = arith.constant 1.000000e+00 : f32
    %16 = vector.broadcast %cst_9 : f32 to vector<8x96xf32>
    %17 = arith.addf %16, %15 : vector<8x96xf32>
    %18 = arith.divf %16, %17 : vector<8x96xf32>
    %19 = vector.extract_strided_slice %12 {offsets = [0, 96], sizes = [8, 32], strides = [1, 1]} : vector<8x128xf32> to vector<8x32xf32>
    %20 = math.tanh %19 : vector<8x32xf32>
    %21 = vector.extract_strided_slice %18 {offsets = [0, 0], sizes = [8, 32], strides = [1, 1]} : vector<8x96xf32> to vector<8x32xf32>
    %22 = vector.extract_strided_slice %18 {offsets = [0, 32], sizes = [8, 32], strides = [1, 1]} : vector<8x96xf32> to vector<8x32xf32>
    %23 = vector.extract_strided_slice %18 {offsets = [0, 64], sizes = [8, 32], strides = [1, 1]} : vector<8x96xf32> to vector<8x32xf32>
    %24 = arith.mulf %22, %5 : vector<8x32xf32>
    %25 = arith.mulf %21, %20 : vector<8x32xf32>
    %26 = arith.addf %24, %25 : vector<8x32xf32>
    %27 = math.tanh %26 : vector<8x32xf32>
    %28 = arith.mulf %23, %27 : vector<8x32xf32>
    %29 = arith.truncf %28 : vector<8x32xf32> to vector<8x32xbf16>
    %30 = arith.index_cast %c0_i32_6 : i32 to index
    %c0_10 = arith.constant 0 : index
    %c0_11 = arith.constant 0 : index
    %31 = vector.load %arg6[%30, %c0_10, %c0_11] : memref<8x8x32xbf16, #tpu.memory_space<vmem>>, vector<1x8x32xbf16>
    %32 = vector.shape_cast %31 : vector<1x8x32xbf16> to vector<8x32xbf16>
    %33 = vector.shape_cast %29 : vector<8x32xbf16> to vector<1x8x32xbf16>
    tpu.vector_store %arg6[%30, %c0_10, %c0_11], %33 {strides = array<i32>} : memref<8x8x32xbf16, #tpu.memory_space<vmem>>, vector<1x8x32xbf16>,
    %c1_i32 = arith.constant 1 : i32
    %34 = arith.index_cast %c1_i32 : i32 to index
    %c0_12 = arith.constant 0 : index
    %c0_13 = arith.constant 0 : index
    %35 = vector.load %arg2[%34, %c0_12, %c0_13] : memref<8x8x128xbf16, #tpu.memory_space<vmem>>, vector<1x8x128xbf16>
    %36 = vector.shape_cast %35 : vector<1x8x128xbf16> to vector<8x128xbf16>
    %37 = arith.extf %36 : vector<8x128xbf16> to vector<8x128xf32>
    %38 = arith.truncf %28 : vector<8x32xf32> to vector<8x32xbf16>
    %cst_14 = arith.constant dense<0.000000e+00> : vector<8x128xf32>
    %39 = tpu.matmul %38, %3, %cst_14 {dimension_numbers = #tpu.dot_dimension_numbers<[1], [0], [0], [1], [0, 0, 1, 1], [], []>} : vector<8x32xbf16>, vector<32x128xbf16>, vector<8x128xf32> -> vector<8x128xf32>
    %40 = arith.addf %37, %39 : vector<8x128xf32>
    %41 = vector.extract_strided_slice %40 {offsets = [0, 0], sizes = [8, 96], strides = [1, 1]} : vector<8x128xf32> to vector<8x96xf32>
    %42 = arith.negf %41 : vector<8x96xf32>
    %43 = math.exp %42 : vector<8x96xf32>
    %cst_15 = arith.constant 1.000000e+00 : f32
    %44 = vector.broadcast %cst_15 : f32 to vector<8x96xf32>
    %45 = arith.addf %44, %43 : vector<8x96xf32>
    %46 = arith.divf %44, %45 : vector<8x96xf32>
    %47 = vector.extract_strided_slice %40 {offsets = [0, 96], sizes = [8, 32], strides = [1, 1]} : vector<8x128xf32> to vector<8x32xf32>
    %48 = math.tanh %47 : vector<8x32xf32>
    %49 = vector.extract_strided_slice %46 {offsets = [0, 0], sizes = [8, 32], strides = [1, 1]} : vector<8x96xf32> to vector<8x32xf32>
    %50 = vector.extract_strided_slice %46 {offsets = [0, 32], sizes = [8, 32], strides = [1, 1]} : vector<8x96xf32> to vector<8x32xf32>
    %51 = vector.extract_strided_slice %46 {offsets = [0, 64], sizes = [8, 32], strides = [1, 1]} : vector<8x96xf32> to vector<8x32xf32>
    %52 = arith.mulf %50, %26 : vector<8x32xf32>
    %53 = arith.mulf %49, %48 : vector<8x32xf32>
    %54 = arith.addf %52, %53 : vector<8x32xf32>
    %55 = math.tanh %54 : vector<8x32xf32>
    %56 = arith.mulf %51, %55 : vector<8x32xf32>
    %57 = arith.truncf %56 : vector<8x32xf32> to vector<8x32xbf16>
    %58 = arith.index_cast %c1_i32 : i32 to index
    %c0_16 = arith.constant 0 : index
    %c0_17 = arith.constant 0 : index
    %59 = vector.load %arg6[%58, %c0_16, %c0_17] : memref<8x8x32xbf16, #tpu.memory_space<vmem>>, vector<1x8x32xbf16>
    %60 = vector.shape_cast %59 : vector<1x8x32xbf16> to vector<8x32xbf16>
    %61 = vector.shape_cast %57 : vector<8x32xbf16> to vector<1x8x32xbf16>
    tpu.vector_store %arg6[%58, %c0_16, %c0_17], %61 {strides = array<i32>} : memref<8x8x32xbf16, #tpu.memory_space<vmem>>, vector<1x8x32xbf16>,
    %c2_i32 = arith.constant 2 : i32
    %62 = arith.index_cast %c2_i32 : i32 to index
    %c0_18 = arith.constant 0 : index
    %c0_19 = arith.constant 0 : index
    %63 = vector.load %arg2[%62, %c0_18, %c0_19] : memref<8x8x128xbf16, #tpu.memory_space<vmem>>, vector<1x8x128xbf16>
    %64 = vector.shape_cast %63 : vector<1x8x128xbf16> to vector<8x128xbf16>
    %65 = arith.extf %64 : vector<8x128xbf16> to vector<8x128xf32>
    %66 = arith.truncf %56 : vector<8x32xf32> to vector<8x32xbf16>
    %cst_20 = arith.constant dense<0.000000e+00> : vector<8x128xf32>
    %67 = tpu.matmul %66, %3, %cst_20 {dimension_numbers = #tpu.dot_dimension_numbers<[1], [0], [0], [1], [0, 0, 1, 1], [], []>} : vector<8x32xbf16>, vector<32x128xbf16>, vector<8x128xf32> -> vector<8x128xf32>
    %68 = arith.addf %65, %67 : vector<8x128xf32>
    %69 = vector.extract_strided_slice %68 {offsets = [0, 0], sizes = [8, 96], strides = [1, 1]} : vector<8x128xf32> to vector<8x96xf32>
    %70 = arith.negf %69 : vector<8x96xf32>
    %71 = math.exp %70 : vector<8x96xf32>
    %cst_21 = arith.constant 1.000000e+00 : f32
    %72 = vector.broadcast %cst_21 : f32 to vector<8x96xf32>
    %73 = arith.addf %72, %71 : vector<8x96xf32>
    %74 = arith.divf %72, %73 : vector<8x96xf32>
    %75 = vector.extract_strided_slice %68 {offsets = [0, 96], sizes = [8, 32], strides = [1, 1]} : vector<8x128xf32> to vector<8x32xf32>
    %76 = math.tanh %75 : vector<8x32xf32>
    %77 = vector.extract_strided_slice %74 {offsets = [0, 0], sizes = [8, 32], strides = [1, 1]} : vector<8x96xf32> to vector<8x32xf32>
    %78 = vector.extract_strided_slice %74 {offsets = [0, 32], sizes = [8, 32], strides = [1, 1]} : vector<8x96xf32> to vector<8x32xf32>
    %79 = vector.extract_strided_slice %74 {offsets = [0, 64], sizes = [8, 32], strides = [1, 1]} : vector<8x96xf32> to vector<8x32xf32>
    %80 = arith.mulf %78, %54 : vector<8x32xf32>
    %81 = arith.mulf %77, %76 : vector<8x32xf32>
    %82 = arith.addf %80, %81 : vector<8x32xf32>
    %83 = math.tanh %82 : vector<8x32xf32>
    %84 = arith.mulf %79, %83 : vector<8x32xf32>
    %85 = arith.truncf %84 : vector<8x32xf32> to vector<8x32xbf16>
    %86 = arith.index_cast %c2_i32 : i32 to index
    %c0_22 = arith.constant 0 : index
    %c0_23 = arith.constant 0 : index
    %87 = vector.load %arg6[%86, %c0_22, %c0_23] : memref<8x8x32xbf16, #tpu.memory_space<vmem>>, vector<1x8x32xbf16>
    %88 = vector.shape_cast %87 : vector<1x8x32xbf16> to vector<8x32xbf16>
    %89 = vector.shape_cast %85 : vector<8x32xbf16> to vector<1x8x32xbf16>
    tpu.vector_store %arg6[%86, %c0_22, %c0_23], %89 {strides = array<i32>} : memref<8x8x32xbf16, #tpu.memory_space<vmem>>, vector<1x8x32xbf16>,
    %c3_i32 = arith.constant 3 : i32
    %90 = arith.index_cast %c3_i32 : i32 to index
    %c0_24 = arith.constant 0 : index
    %c0_25 = arith.constant 0 : index
    %91 = vector.load %arg2[%90, %c0_24, %c0_25] : memref<8x8x128xbf16, #tpu.memory_space<vmem>>, vector<1x8x128xbf16>
    %92 = vector.shape_cast %91 : vector<1x8x128xbf16> to vector<8x128xbf16>
    %93 = arith.extf %92 : vector<8x128xbf16> to vector<8x128xf32>
    %94 = arith.truncf %84 : vector<8x32xf32> to vector<8x32xbf16>
    %cst_26 = arith.constant dense<0.000000e+00> : vector<8x128xf32>
    %95 = tpu.matmul %94, %3, %cst_26 {dimension_numbers = #tpu.dot_dimension_numbers<[1], [0], [0], [1], [0, 0, 1, 1], [], []>} : vector<8x32xbf16>, vector<32x128xbf16>, vector<8x128xf32> -> vector<8x128xf32>
    %96 = arith.addf %93, %95 : vector<8x128xf32>
    %97 = vector.extract_strided_slice %96 {offsets = [0, 0], sizes = [8, 96], strides = [1, 1]} : vector<8x128xf32> to vector<8x96xf32>
    %98 = arith.negf %97 : vector<8x96xf32>
    %99 = math.exp %98 : vector<8x96xf32>
    %cst_27 = arith.constant 1.000000e+00 : f32
    %100 = vector.broadcast %cst_27 : f32 to vector<8x96xf32>
    %101 = arith.addf %100, %99 : vector<8x96xf32>
    %102 = arith.divf %100, %101 : vector<8x96xf32>
    %103 = vector.extract_strided_slice %96 {offsets = [0, 96], sizes = [8, 32], strides = [1, 1]} : vector<8x128xf32> to vector<8x32xf32>
    %104 = math.tanh %103 : vector<8x32xf32>
    %105 = vector.extract_strided_slice %102 {offsets = [0, 0], sizes = [8, 32], strides = [1, 1]} : vector<8x96xf32> to vector<8x32xf32>
    %106 = vector.extract_strided_slice %102 {offsets = [0, 32], sizes = [8, 32], strides = [1, 1]} : vector<8x96xf32> to vector<8x32xf32>
    %107 = vector.extract_strided_slice %102 {offsets = [0, 64], sizes = [8, 32], strides = [1, 1]} : vector<8x96xf32> to vector<8x32xf32>
    %108 = arith.mulf %106, %82 : vector<8x32xf32>
    %109 = arith.mulf %105, %104 : vector<8x32xf32>
    %110 = arith.addf %108, %109 : vector<8x32xf32>
    %111 = math.tanh %110 : vector<8x32xf32>
    %112 = arith.mulf %107, %111 : vector<8x32xf32>
    %113 = arith.truncf %112 : vector<8x32xf32> to vector<8x32xbf16>
    %114 = arith.index_cast %c3_i32 : i32 to index
    %c0_28 = arith.constant 0 : index
    %c0_29 = arith.constant 0 : index
    %115 = vector.load %arg6[%114, %c0_28, %c0_29] : memref<8x8x32xbf16, #tpu.memory_space<vmem>>, vector<1x8x32xbf16>
    %116 = vector.shape_cast %115 : vector<1x8x32xbf16> to vector<8x32xbf16>
    %117 = vector.shape_cast %113 : vector<8x32xbf16> to vector<1x8x32xbf16>
    tpu.vector_store %arg6[%114, %c0_28, %c0_29], %117 {strides = array<i32>} : memref<8x8x32xbf16, #tpu.memory_space<vmem>>, vector<1x8x32xbf16>,
    %c4_i32 = arith.constant 4 : i32
    %118 = arith.index_cast %c4_i32 : i32 to index
    %c0_30 = arith.constant 0 : index
    %c0_31 = arith.constant 0 : index
    %119 = vector.load %arg2[%118, %c0_30, %c0_31] : memref<8x8x128xbf16, #tpu.memory_space<vmem>>, vector<1x8x128xbf16>
    %120 = vector.shape_cast %119 : vector<1x8x128xbf16> to vector<8x128xbf16>
    %121 = arith.extf %120 : vector<8x128xbf16> to vector<8x128xf32>
    %122 = arith.truncf %112 : vector<8x32xf32> to vector<8x32xbf16>
    %cst_32 = arith.constant dense<0.000000e+00> : vector<8x128xf32>
    %123 = tpu.matmul %122, %3, %cst_32 {dimension_numbers = #tpu.dot_dimension_numbers<[1], [0], [0], [1], [0, 0, 1, 1], [], []>} : vector<8x32xbf16>, vector<32x128xbf16>, vector<8x128xf32> -> vector<8x128xf32>
    %124 = arith.addf %121, %123 : vector<8x128xf32>
    %125 = vector.extract_strided_slice %124 {offsets = [0, 0], sizes = [8, 96], strides = [1, 1]} : vector<8x128xf32> to vector<8x96xf32>
    %126 = arith.negf %125 : vector<8x96xf32>
    %127 = math.exp %126 : vector<8x96xf32>
    %cst_33 = arith.constant 1.000000e+00 : f32
    %128 = vector.broadcast %cst_33 : f32 to vector<8x96xf32>
    %129 = arith.addf %128, %127 : vector<8x96xf32>
    %130 = arith.divf %128, %129 : vector<8x96xf32>
    %131 = vector.extract_strided_slice %124 {offsets = [0, 96], sizes = [8, 32], strides = [1, 1]} : vector<8x128xf32> to vector<8x32xf32>
    %132 = math.tanh %131 : vector<8x32xf32>
    %133 = vector.extract_strided_slice %130 {offsets = [0, 0], sizes = [8, 32], strides = [1, 1]} : vector<8x96xf32> to vector<8x32xf32>
    %134 = vector.extract_strided_slice %130 {offsets = [0, 32], sizes = [8, 32], strides = [1, 1]} : vector<8x96xf32> to vector<8x32xf32>
    %135 = vector.extract_strided_slice %130 {offsets = [0, 64], sizes = [8, 32], strides = [1, 1]} : vector<8x96xf32> to vector<8x32xf32>
    %136 = arith.mulf %134, %110 : vector<8x32xf32>
    %137 = arith.mulf %133, %132 : vector<8x32xf32>
    %138 = arith.addf %136, %137 : vector<8x32xf32>
    %139 = math.tanh %138 : vector<8x32xf32>
    %140 = arith.mulf %135, %139 : vector<8x32xf32>
    %141 = arith.truncf %140 : vector<8x32xf32> to vector<8x32xbf16>
    %142 = arith.index_cast %c4_i32 : i32 to index
    %c0_34 = arith.constant 0 : index
    %c0_35 = arith.constant 0 : index
    %143 = vector.load %arg6[%142, %c0_34, %c0_35] : memref<8x8x32xbf16, #tpu.memory_space<vmem>>, vector<1x8x32xbf16>
    %144 = vector.shape_cast %143 : vector<1x8x32xbf16> to vector<8x32xbf16>
    %145 = vector.shape_cast %141 : vector<8x32xbf16> to vector<1x8x32xbf16>
    tpu.vector_store %arg6[%142, %c0_34, %c0_35], %145 {strides = array<i32>} : memref<8x8x32xbf16, #tpu.memory_space<vmem>>, vector<1x8x32xbf16>,
    %c5_i32 = arith.constant 5 : i32
    %146 = arith.index_cast %c5_i32 : i32 to index
    %c0_36 = arith.constant 0 : index
    %c0_37 = arith.constant 0 : index
    %147 = vector.load %arg2[%146, %c0_36, %c0_37] : memref<8x8x128xbf16, #tpu.memory_space<vmem>>, vector<1x8x128xbf16>
    %148 = vector.shape_cast %147 : vector<1x8x128xbf16> to vector<8x128xbf16>
    %149 = arith.extf %148 : vector<8x128xbf16> to vector<8x128xf32>
    %150 = arith.truncf %140 : vector<8x32xf32> to vector<8x32xbf16>
    %cst_38 = arith.constant dense<0.000000e+00> : vector<8x128xf32>
    %151 = tpu.matmul %150, %3, %cst_38 {dimension_numbers = #tpu.dot_dimension_numbers<[1], [0], [0], [1], [0, 0, 1, 1], [], []>} : vector<8x32xbf16>, vector<32x128xbf16>, vector<8x128xf32> -> vector<8x128xf32>
    %152 = arith.addf %149, %151 : vector<8x128xf32>
    %153 = vector.extract_strided_slice %152 {offsets = [0, 0], sizes = [8, 96], strides = [1, 1]} : vector<8x128xf32> to vector<8x96xf32>
    %154 = arith.negf %153 : vector<8x96xf32>
    %155 = math.exp %154 : vector<8x96xf32>
    %cst_39 = arith.constant 1.000000e+00 : f32
    %156 = vector.broadcast %cst_39 : f32 to vector<8x96xf32>
    %157 = arith.addf %156, %155 : vector<8x96xf32>
    %158 = arith.divf %156, %157 : vector<8x96xf32>
    %159 = vector.extract_strided_slice %152 {offsets = [0, 96], sizes = [8, 32], strides = [1, 1]} : vector<8x128xf32> to vector<8x32xf32>
    %160 = math.tanh %159 : vector<8x32xf32>
    %161 = vector.extract_strided_slice %158 {offsets = [0, 0], sizes = [8, 32], strides = [1, 1]} : vector<8x96xf32> to vector<8x32xf32>
    %162 = vector.extract_strided_slice %158 {offsets = [0, 32], sizes = [8, 32], strides = [1, 1]} : vector<8x96xf32> to vector<8x32xf32>
    %163 = vector.extract_strided_slice %158 {offsets = [0, 64], sizes = [8, 32], strides = [1, 1]} : vector<8x96xf32> to vector<8x32xf32>
    %164 = arith.mulf %162, %138 : vector<8x32xf32>
    %165 = arith.mulf %161, %160 : vector<8x32xf32>
    %166 = arith.addf %164, %165 : vector<8x32xf32>
    %167 = math.tanh %166 : vector<8x32xf32>
    %168 = arith.mulf %163, %167 : vector<8x32xf32>
    %169 = arith.truncf %168 : vector<8x32xf32> to vector<8x32xbf16>
    %170 = arith.index_cast %c5_i32 : i32 to index
    %c0_40 = arith.constant 0 : index
    %c0_41 = arith.constant 0 : index
    %171 = vector.load %arg6[%170, %c0_40, %c0_41] : memref<8x8x32xbf16, #tpu.memory_space<vmem>>, vector<1x8x32xbf16>
    %172 = vector.shape_cast %171 : vector<1x8x32xbf16> to vector<8x32xbf16>
    %173 = vector.shape_cast %169 : vector<8x32xbf16> to vector<1x8x32xbf16>
    tpu.vector_store %arg6[%170, %c0_40, %c0_41], %173 {strides = array<i32>} : memref<8x8x32xbf16, #tpu.memory_space<vmem>>, vector<1x8x32xbf16>,
    %c6_i32 = arith.constant 6 : i32
    %174 = arith.index_cast %c6_i32 : i32 to index
    %c0_42 = arith.constant 0 : index
    %c0_43 = arith.constant 0 : index
    %175 = vector.load %arg2[%174, %c0_42, %c0_43] : memref<8x8x128xbf16, #tpu.memory_space<vmem>>, vector<1x8x128xbf16>
    %176 = vector.shape_cast %175 : vector<1x8x128xbf16> to vector<8x128xbf16>
    %177 = arith.extf %176 : vector<8x128xbf16> to vector<8x128xf32>
    %178 = arith.truncf %168 : vector<8x32xf32> to vector<8x32xbf16>
    %cst_44 = arith.constant dense<0.000000e+00> : vector<8x128xf32>
    %179 = tpu.matmul %178, %3, %cst_44 {dimension_numbers = #tpu.dot_dimension_numbers<[1], [0], [0], [1], [0, 0, 1, 1], [], []>} : vector<8x32xbf16>, vector<32x128xbf16>, vector<8x128xf32> -> vector<8x128xf32>
    %180 = arith.addf %177, %179 : vector<8x128xf32>
    %181 = vector.extract_strided_slice %180 {offsets = [0, 0], sizes = [8, 96], strides = [1, 1]} : vector<8x128xf32> to vector<8x96xf32>
    %182 = arith.negf %181 : vector<8x96xf32>
    %183 = math.exp %182 : vector<8x96xf32>
    %cst_45 = arith.constant 1.000000e+00 : f32
    %184 = vector.broadcast %cst_45 : f32 to vector<8x96xf32>
    %185 = arith.addf %184, %183 : vector<8x96xf32>
    %186 = arith.divf %184, %185 : vector<8x96xf32>
    %187 = vector.extract_strided_slice %180 {offsets = [0, 96], sizes = [8, 32], strides = [1, 1]} : vector<8x128xf32> to vector<8x32xf32>
    %188 = math.tanh %187 : vector<8x32xf32>
    %189 = vector.extract_strided_slice %186 {offsets = [0, 0], sizes = [8, 32], strides = [1, 1]} : vector<8x96xf32> to vector<8x32xf32>
    %190 = vector.extract_strided_slice %186 {offsets = [0, 32], sizes = [8, 32], strides = [1, 1]} : vector<8x96xf32> to vector<8x32xf32>
    %191 = vector.extract_strided_slice %186 {offsets = [0, 64], sizes = [8, 32], strides = [1, 1]} : vector<8x96xf32> to vector<8x32xf32>
    %192 = arith.mulf %190, %166 : vector<8x32xf32>
    %193 = arith.mulf %189, %188 : vector<8x32xf32>
    %194 = arith.addf %192, %193 : vector<8x32xf32>
    %195 = math.tanh %194 : vector<8x32xf32>
    %196 = arith.mulf %191, %195 : vector<8x32xf32>
    %197 = arith.truncf %196 : vector<8x32xf32> to vector<8x32xbf16>
    %198 = arith.index_cast %c6_i32 : i32 to index
    %c0_46 = arith.constant 0 : index
    %c0_47 = arith.constant 0 : index
    %199 = vector.load %arg6[%198, %c0_46, %c0_47] : memref<8x8x32xbf16, #tpu.memory_space<vmem>>, vector<1x8x32xbf16>
    %200 = vector.shape_cast %199 : vector<1x8x32xbf16> to vector<8x32xbf16>
    %201 = vector.shape_cast %197 : vector<8x32xbf16> to vector<1x8x32xbf16>
    tpu.vector_store %arg6[%198, %c0_46, %c0_47], %201 {strides = array<i32>} : memref<8x8x32xbf16, #tpu.memory_space<vmem>>, vector<1x8x32xbf16>,
    %c7_i32 = arith.constant 7 : i32
    %202 = arith.index_cast %c7_i32 : i32 to index
    %c0_48 = arith.constant 0 : index
    %c0_49 = arith.constant 0 : index
    %203 = vector.load %arg2[%202, %c0_48, %c0_49] : memref<8x8x128xbf16, #tpu.memory_space<vmem>>, vector<1x8x128xbf16>
    %204 = vector.shape_cast %203 : vector<1x8x128xbf16> to vector<8x128xbf16>
    %205 = arith.extf %204 : vector<8x128xbf16> to vector<8x128xf32>
    %206 = arith.truncf %196 : vector<8x32xf32> to vector<8x32xbf16>
    %cst_50 = arith.constant dense<0.000000e+00> : vector<8x128xf32>
    %207 = tpu.matmul %206, %3, %cst_50 {dimension_numbers = #tpu.dot_dimension_numbers<[1], [0], [0], [1], [0, 0, 1, 1], [], []>} : vector<8x32xbf16>, vector<32x128xbf16>, vector<8x128xf32> -> vector<8x128xf32>
    %208 = arith.addf %205, %207 : vector<8x128xf32>
    %209 = vector.extract_strided_slice %208 {offsets = [0, 0], sizes = [8, 96], strides = [1, 1]} : vector<8x128xf32> to vector<8x96xf32>
    %210 = arith.negf %209 : vector<8x96xf32>
    %211 = math.exp %210 : vector<8x96xf32>
    %cst_51 = arith.constant 1.000000e+00 : f32
    %212 = vector.broadcast %cst_51 : f32 to vector<8x96xf32>
    %213 = arith.addf %212, %211 : vector<8x96xf32>
    %214 = arith.divf %212, %213 : vector<8x96xf32>
    %215 = vector.extract_strided_slice %208 {offsets = [0, 96], sizes = [8, 32], strides = [1, 1]} : vector<8x128xf32> to vector<8x32xf32>
    %216 = math.tanh %215 : vector<8x32xf32>
    %217 = vector.extract_strided_slice %214 {offsets = [0, 0], sizes = [8, 32], strides = [1, 1]} : vector<8x96xf32> to vector<8x32xf32>
    %218 = vector.extract_strided_slice %214 {offsets = [0, 32], sizes = [8, 32], strides = [1, 1]} : vector<8x96xf32> to vector<8x32xf32>
    %219 = vector.extract_strided_slice %214 {offsets = [0, 64], sizes = [8, 32], strides = [1, 1]} : vector<8x96xf32> to vector<8x32xf32>
    %220 = arith.mulf %218, %194 : vector<8x32xf32>
    %221 = arith.mulf %217, %216 : vector<8x32xf32>
    %222 = arith.addf %220, %221 : vector<8x32xf32>
    %223 = math.tanh %222 : vector<8x32xf32>
    %224 = arith.mulf %219, %223 : vector<8x32xf32>
    %225 = arith.truncf %224 : vector<8x32xf32> to vector<8x32xbf16>
    %226 = arith.index_cast %c7_i32 : i32 to index
    %c0_52 = arith.constant 0 : index
    %c0_53 = arith.constant 0 : index
    %227 = vector.load %arg6[%226, %c0_52, %c0_53] : memref<8x8x32xbf16, #tpu.memory_space<vmem>>, vector<1x8x32xbf16>
    %228 = vector.shape_cast %227 : vector<1x8x32xbf16> to vector<8x32xbf16>
    %229 = vector.shape_cast %225 : vector<8x32xbf16> to vector<1x8x32xbf16>
    tpu.vector_store %arg6[%226, %c0_52, %c0_53], %229 {strides = array<i32>} : memref<8x8x32xbf16, #tpu.memory_space<vmem>>, vector<1x8x32xbf16>,
    %c8_i32 = arith.constant 8 : i32
    %c0_54 = arith.constant 0 : index
    %c0_55 = arith.constant 0 : index
    %230 = vector.load %arg9[%c0_54, %c0_55] : memref<8x32xf32, #tpu.memory_space<vmem>>, vector<8x32xf32>
    tpu.vector_store %arg9[%c0_54, %c0_55], %224 {strides = array<i32>} : memref<8x32xf32, #tpu.memory_space<vmem>>, vector<8x32xf32>,
    %c0_56 = arith.constant 0 : index
    %c0_57 = arith.constant 0 : index
    %231 = vector.load %arg10[%c0_56, %c0_57] : memref<8x32xf32, #tpu.memory_space<vmem>>, vector<8x32xf32>
    tpu.vector_store %arg10[%c0_56, %c0_57], %222 {strides = array<i32>} : memref<8x32xf32, #tpu.memory_space<vmem>>, vector<8x32xf32>,
    %c0_i32_58 = arith.constant 0 : i32
    %232 = arith.cmpi eq, %arg1, %c0_i32_58 : i32
    %233 = arith.extui %232 : i1 to i32
    %c0_i32_59 = arith.constant 0 : i32
    %234 = arith.cmpi ne, %233, %c0_i32_59 : i32
    scf.if %234 {
      %c0_60 = arith.constant 0 : index
      %c0_61 = arith.constant 0 : index
      %235 = vector.load %arg7[%c0_60, %c0_61] : memref<8x32xf32, #tpu.memory_space<vmem>>, vector<8x32xf32>
      tpu.vector_store %arg7[%c0_60, %c0_61], %224 {strides = array<i32>} : memref<8x32xf32, #tpu.memory_space<vmem>>, vector<8x32xf32>,
      %c0_62 = arith.constant 0 : index
      %c0_63 = arith.constant 0 : index
      %236 = vector.load %arg8[%c0_62, %c0_63] : memref<8x32xf32, #tpu.memory_space<vmem>>, vector<8x32xf32>
      tpu.vector_store %arg8[%c0_62, %c0_63], %222 {strides = array<i32>} : memref<8x32xf32, #tpu.memory_space<vmem>>, vector<8x32xf32>,
    } else {
    }
    return
  }
  func.func @transform_0(%arg0: i32, %arg1: i32) -> (i32, i32, i32) {
    %c0_i32 = arith.constant 0 : i32
    %c0_i32_0 = arith.constant 0 : i32
    return %arg1, %arg0, %c0_i32 : i32, i32, i32
  }
  func.func @transform_1(%arg0: i32, %arg1: i32) -> (i32, i32) {
    %c0_i32 = arith.constant 0 : i32
    %c0_i32_0 = arith.constant 0 : i32
    %c0_i32_1 = arith.constant 0 : i32
    return %c0_i32, %c0_i32_0 : i32, i32
  }
  func.func @transform_2(%arg0: i32, %arg1: i32) -> (i32, i32) {
    %c0_i32 = arith.constant 0 : i32
    %c0_i32_0 = arith.constant 0 : i32
    return %arg0, %c0_i32 : i32, i32
  }
  func.func @transform_3(%arg0: i32, %arg1: i32) -> (i32, i32) {
    %c0_i32 = arith.constant 0 : i32
    %c0_i32_0 = arith.constant 0 : i32
    return %arg0, %c0_i32 : i32, i32
  }
  func.func @transform_4(%arg0: i32, %arg1: i32) -> (i32, i32, i32) {
    %c0_i32 = arith.constant 0 : i32
    %c0_i32_0 = arith.constant 0 : i32
    return %arg1, %arg0, %c0_i32 : i32, i32, i32
  }
  func.func @transform_5(%arg0: i32, %arg1: i32) -> (i32, i32) {
    %c0_i32 = arith.constant 0 : i32
    %c0_i32_0 = arith.constant 0 : i32
    return %arg0, %c0_i32 : i32, i32
  }
  func.func @transform_6(%arg0: i32, %arg1: i32) -> (i32, i32) {
    %c0_i32 = arith.constant 0 : i32
    %c0_i32_0 = arith.constant 0 : i32
    return %arg0, %c0_i32 : i32, i32
  }
}

</mosaic_0001>

<bundles_post_ra>
// kernel: text_generation_forward.5
= control target key start
LH: loop header
LB: loop body
LE: loop exit
PB: predicated region body
PF: predicated region fallthrough
CT: control target
= control target key end

     0   :  { %vm79_vm0 = vcmask 261120   ;;  %s297_s1 = inlined_call_operand.vmem [shape: bf16[32,128], index: 1, kind: input, shape index: {}]   ;;  %s298_s2 = inlined_call_operand.vmem [shape: f32[1,128], index: 2, kind: input, shape index: {}]   ;;  %s299_s0 = inlined_call_operand.vmem [shape: bf16[64,32], index: 0, kind: input, shape index: {}]   ;;  %s300_s3 = inlined_call_operand.vmem [shape: bf16[64,128], index: 3, kind: output, shape index: {}]  }
   0x1   :  { %v213_v0 = vld [vmem:[%s297_s1 + $0x8] sm:$0xff]  ;;  %v212_v1 = vld [vmem:[%s297_s1] sm:$0xff]  ;;  %v210_v4 = vld [vmem:[%s299_s0 + $0x10] sm:$0xff] }
   0x2   :  { %98 = vmatpush.bf16.msra.mxu0 %v213_v0  ;;  %237 = vmatpush.bf16.msra.mxu1 %v213_v0  ;;  %v208_v2 = vld [vmem:[%s299_s0] sm:$0xff]  ;;  %v209_v3 = vld [vmem:[%s299_s0 + $0x8] sm:$0xff]  ;;  %v211_v5 = vld [vmem:[%s299_s0 + $0x18] sm:$0xff] }
   0x3   :  { %238 = vmatpush.bf16.msra.mxu2 %v213_v0  ;;  %239 = vmatpush.bf16.msra.mxu3 %v213_v0  ;;  %v243_v8 = vld [vmem:[%s298_s2] ss:$0 sm:$0xff] }
   0x6   :  { %99 = vmatpush.bf16.msra.mxu0 %v212_v1  ;;  %240 = vmatpush.bf16.msra.mxu1 %v212_v1 }
   0x7   :  { %241 = vmatpush.bf16.msra.mxu2 %v212_v1  ;;  %242 = vmatpush.bf16.msra.mxu3 %v212_v1 }
   0x9   :  { %204 = vmatmul.msk.bf16.vlgmr.msra.gmra.mxu0 %vm79_vm0, %v208_v2  ;;  %205 = vmatmul.msk.bf16.vlgmr.msra.gmra.mxu1 %vm79_vm0, %v209_v3 }
   0xa   :  { %206 = vmatmul.msk.bf16.vlgmr.msra.gmra.mxu2 %vm79_vm0, %v210_v4  ;;  %207 = vmatmul.msk.bf16.vlgmr.msra.gmra.mxu3 %vm79_vm0, %v211_v5 }
  0x86   :  { %v101_v6 = vpop.f32.mrf.mxu0  ;;  %v106_v7 = vpop.f32.mrf.mxu1 }
  0x87   :  { %v152_v13 = vadd.f32 %v243_v8, %v101_v6  ;;  %v154_v14 = vadd.f32 %v243_v8, %v106_v7 }
  0x8d   :  { %v111_v9 = vpop.f32.mrf.mxu2  ;;  %v116_v10 = vpop.f32.mrf.mxu3 }
  0x8e   :  { %v103_v11 = vpop.f32.mrf.mxu0  ;;  %v108_v12 = vpop.f32.mrf.mxu1  ;;  %v156_v21 = vadd.f32 %v243_v8, %v111_v9  ;;  %v158_v22 = vadd.f32 %v243_v8, %v116_v10 }
  0x8f   :  { %v153_v15 = vadd.f32 %v243_v8, %v103_v11  ;;  %v155_v16 = vadd.f32 %v243_v8, %v108_v12 }
  0x91   :  { %v217_v17 = vpack.c.bf16 %v153_v15, %v152_v13  ;;  %v222_v18 = vpack.c.bf16 %v155_v16, %v154_v14 }
  0x93   :  { %218 = vst [vmem:[%s300_s3] sm:$0xff] %v217_v17  }
  0x94   :  { %234 = vst [vmem:[%s300_s3 + $0x8] sm:$0xff] %v222_v18  }
  0x95   :  { %v113_v19 = vpop.f32.mrf.mxu2  ;;  %v118_v20 = vpop.f32.mrf.mxu3 }
  0x96   :  { %v157_v23 = vadd.f32 %v243_v8, %v113_v19  ;;  %v159_v24 = vadd.f32 %v243_v8, %v118_v20 }
  0x98   :  { %v227_v25 = vpack.c.bf16 %v157_v23, %v156_v21  ;;  %v232_v26 = vpack.c.bf16 %v159_v24, %v158_v22 }
  0x9a   :  { %235 = vst [vmem:[%s300_s3 + $0x10] sm:$0xff] %v227_v25  }
  0x9b   :  { %236 = vst [vmem:[%s300_s3 + $0x18] sm:$0xff] %v232_v26  }

// kernel: text_generation_forward.9
= control target key start
LH: loop header
LB: loop body
LE: loop exit
PB: predicated region body
PF: predicated region fallthrough
CT: control target
= control target key end

     0   :  { %vm79_vm0 = vcmask 261120   ;;  %s278_s1 = inlined_call_operand.vmem [shape: bf16[32,128], index: 1, kind: input, shape index: {}]   ;;  %s279_s2 = inlined_call_operand.vmem [shape: f32[1,128], index: 2, kind: input, shape index: {}]   ;;  %s280_s0 = inlined_call_operand.vmem [shape: bf16[64,32], index: 0, kind: input, shape index: {}]   ;;  %s281_s3 = inlined_call_operand.vmem [shape: f32[64,128], index: 3, kind: output, shape index: {}]  }
   0x1   :  { %v205_v0 = vld [vmem:[%s278_s1 + $0x8] sm:$0xff]  ;;  %v204_v1 = vld [vmem:[%s278_s1] sm:$0xff]  ;;  %v202_v4 = vld [vmem:[%s280_s0 + $0x10] sm:$0xff] }
   0x2   :  { %98 = vmatpush.bf16.msra.mxu0 %v205_v0  ;;  %206 = vmatpush.bf16.msra.mxu1 %v205_v0  ;;  %v200_v2 = vld [vmem:[%s280_s0] sm:$0xff]  ;;  %v201_v3 = vld [vmem:[%s280_s0 + $0x8] sm:$0xff]  ;;  %v203_v5 = vld [vmem:[%s280_s0 + $0x18] sm:$0xff] }
   0x3   :  { %207 = vmatpush.bf16.msra.mxu2 %v205_v0  ;;  %208 = vmatpush.bf16.msra.mxu3 %v205_v0  ;;  %v212_v6 = vld [vmem:[%s279_s2] ss:$0 sm:$0xff] }
   0x6   :  { %99 = vmatpush.bf16.msra.mxu0 %v204_v1  ;;  %209 = vmatpush.bf16.msra.mxu1 %v204_v1 }
   0x7   :  { %210 = vmatpush.bf16.msra.mxu2 %v204_v1  ;;  %211 = vmatpush.bf16.msra.mxu3 %v204_v1 }
   0x9   :  { %196 = vmatmul.msk.bf16.vlgmr.msra.gmra.mxu0 %vm79_vm0, %v200_v2  ;;  %197 = vmatmul.msk.bf16.vlgmr.msra.gmra.mxu1 %vm79_vm0, %v201_v3 }
   0xa   :  { %198 = vmatmul.msk.bf16.vlgmr.msra.gmra.mxu2 %vm79_vm0, %v202_v4  ;;  %199 = vmatmul.msk.bf16.vlgmr.msra.gmra.mxu3 %vm79_vm0, %v203_v5 }
  0x86   :  { %v101_v7 = vpop.f32.mrf.mxu0  ;;  %v106_v8 = vpop.f32.mrf.mxu1 }
  0x87   :  { %v152_v9 = vadd.f32 %v212_v6, %v101_v7  ;;  %v154_v10 = vadd.f32 %v212_v6, %v106_v8 }
  0x89   :  { %160 = vst [vmem:[%s281_s3] sm:$0xff] %v152_v9 }
  0x8a   :  { %162 = vst [vmem:[%s281_s3 + $0x10] sm:$0xff] %v154_v10 }
  0x8d   :  { %v111_v11 = vpop.f32.mrf.mxu2  ;;  %v116_v12 = vpop.f32.mrf.mxu3 }
  0x8e   :  { %v156_v13 = vadd.f32 %v212_v6, %v111_v11  ;;  %v158_v14 = vadd.f32 %v212_v6, %v116_v12  ;;  %v103_v15 = vpop.f32.mrf.mxu0  ;;  %v108_v16 = vpop.f32.mrf.mxu1 }
  0x8f   :  { %v153_v17 = vadd.f32 %v212_v6, %v103_v15  ;;  %v155_v18 = vadd.f32 %v212_v6, %v108_v16 }
  0x90   :  { %164 = vst [vmem:[%s281_s3 + $0x20] sm:$0xff] %v156_v13 }
  0x91   :  { %166 = vst [vmem:[%s281_s3 + $0x30] sm:$0xff] %v158_v14 }
  0x92   :  { %161 = vst [vmem:[%s281_s3 + $0x8] sm:$0xff] %v153_v17 }
  0x93   :  { %163 = vst [vmem:[%s281_s3 + $0x18] sm:$0xff] %v155_v18 }
  0x95   :  { %v113_v19 = vpop.f32.mrf.mxu2  ;;  %v118_v20 = vpop.f32.mrf.mxu3 }
  0x96   :  { %v157_v21 = vadd.f32 %v212_v6, %v113_v19  ;;  %v159_v22 = vadd.f32 %v212_v6, %v118_v20 }
  0x98   :  { %165 = vst [vmem:[%s281_s3 + $0x28] sm:$0xff] %v157_v21 }
  0x99   :  { %167 = vst [vmem:[%s281_s3 + $0x38] sm:$0xff] %v159_v22 }

// kernel: text_generation_forward.6
= control target key start
LH: loop header
LB: loop body
LE: loop exit
PB: predicated region body
PF: predicated region fallthrough
CT: control target
= control target key end

     0   :  { %vm26_vm0 = vcmask 261120   ;;  %s727_s29 = smov 32   ;;  %s729_s19 = smov 96   ;;  %s909_s1 = inlined_call_operand.vmem [shape: bf16[32,128], index: 1, kind: input, shape index: {}]   ;;  %s910_s2 = inlined_call_operand.vmem [shape: f32[8,32], index: 2, kind: input, shape index: {}, may-alias: {2,3}]   ;;  %s911_s3 = inlined_call_operand.vmem [shape: f32[8,32], index: 3, kind: input, shape index: {}, may-alias: {2,3}]   ;;  %s912_s0 = inlined_call_operand.vmem [shape: bf16[8,8,128], index: 0, kind: input, shape index: {}]   ;;  %s913_s4 = inlined_call_operand.vmem [shape: bf16[8,8,32], index: 4, kind: output, shape index: {0}]   ;;  %s914_s6 = inlined_call_operand.vmem [shape: f32[8,32], index: 6, kind: output, shape index: {2}]   ;;  %s915_s5 = inlined_call_operand.vmem [shape: f32[8,32], index: 5, kind: output, shape index: {1}]  }
   0x1   :  { %v659_v0 = vld [vmem:[%s909_s1 + $0x8] sm:$0xff]  ;;  %v25_v1 = vld [vmem:[%s910_s2] sm:$0xff] }
   0x2   :  { %27 = vst.msk [vmem:[#allocation2] sm:$0xff] %vm26_vm0, %v25_v1  ;;  %61 = vmatpush.bf16.msra.mxu0 %v659_v0  ;;  %v658_v2 = vld [vmem:[%s909_s1] sm:$0xff]  ;;  %133 = vmatpush.bf16.msra.mxu1 %v659_v0 }
   0x3   :  { %201 = vmatpush.bf16.msra.mxu2 %v659_v0  ;;  %269 = vmatpush.bf16.msra.mxu3 %v659_v0  ;;  %v28_v5 = vld [vmem:[%s911_s3] sm:$0xff]  ;;  %s728_s3 = smov 64  }
   0x4   :  { %29 = vst.msk [vmem:[#allocation3] sm:$0xff] %vm26_vm0, %v28_v5  ;;  %v36_v6 = vld [vmem:[%s912_s0] sm:$0xf]  ;;  %v630_v39 = vld [vmem:[%s912_s0 + $0x4] sm:$0xff]  }
   0x5   :  { %v37_v7 = vunpack.c.l.bf16 %v36_v6  ;;  %v119_v40 = vunpack.c.l.bf16 %v630_v39  ;;  %v187_v6 = vunpack.c.h.bf16 %v630_v39 }
   0x6   :  { %62 = vmatpush.bf16.msra.mxu0 %v658_v2  ;;  %134 = vmatpush.bf16.msra.mxu1 %v658_v2 }
   0x7   :  { %202 = vmatpush.bf16.msra.mxu2 %v658_v2  ;;  %270 = vmatpush.bf16.msra.mxu3 %v658_v2 }
   0x9   :  { %v34_v3 = vld [vmem:[#allocation2] sm:$0xff] }
   0xa   :  { %337 = vmatpush.bf16.msrb.mxu0 %v659_v0  ;;  %405 = vmatpush.bf16.msrb.mxu1 %v659_v0  ;;  %v38_v4 = vpack.c.bf16 %v34_v3, %v34_v3 }
   0xb   :  { %473 = vmatpush.bf16.msrb.mxu2 %v659_v0  ;;  %541 = vmatpush.bf16.msrb.mxu3 %v659_v0  ;;  %v35_v12 = vld [vmem:[#allocation3] sm:$0xff] }
   0xc   :  { %628 = vmatmul.msk.bf16.vlgmr.msra.gmra.mxu0 %vm26_vm0, %v38_v4 }
   0xe   :  { %338 = vmatpush.bf16.msrb.mxu0 %v658_v2  ;;  %406 = vmatpush.bf16.msrb.mxu1 %v658_v2 }
   0xf   :  { %474 = vmatpush.bf16.msrb.mxu2 %v658_v2  ;;  %542 = vmatpush.bf16.msrb.mxu3 %v658_v2 }
  0x89   :  { %v64_v8 = vpop.f32.mrf.mxu0 }
  0x8a   :  { %v68_v9 = vadd.f32 %v64_v8, %v37_v7 }
  0x8c   :  { %663 = vtanh.f32 %v68_v9  ;;  %v629_v13 = vmul.f32 -1.442695, %v68_v9 }
  0x8e   :  { %665 = vpow2.f32 %v629_v13 }
  0x91   :  { %v66_v10 = vpop.f32.mrf.mxu0 }
  0x92   :  { %v664_v11 = vpop.eup %663 }
  0x93   :  { %95 = vrot.lane.b32.xlu0 %v664_v11, %s727_s29 }
  0x94   :  { %v666_v14 = vpop.eup %665 }
  0x95   :  { %v72_v15 = vadd.f32 1.0, %v666_v14 }
  0x97   :  { %667 = vrcp.f32 %v72_v15  ;;  %v84_v21 = vand.u32 2147483648, %v72_v15  ;;  %vm78_vm2 = vweird.f32 %v72_v15  ;;  %v82_v22 = vand.u32 2147483647, %v72_v15 }
  0x99   :  { %v85_v24 = vor.u32 1.1754944e-38, %v84_v21  ;;  %vm83_vm4 = vcmp.eq.f32.partialorder %v82_v22, 8.507059e+37 }
  0x9b   :  { %90 = vrot.lane.b32.xlu0 %v35_v12, %s727_s29 }
  0x9d   :  { %v668_v16 = vpop.eup %667 }
  0x9e   :  { %v74_v17 = vmul.f32 %v668_v16, %v72_v15  ;;  %vm79_vm1 = vweird.f32 %v668_v16 }
  0x9f   :  { %vm80_vm3 = vmor %vm78_vm2, %vm79_vm1 }
  0xa0   :  { %v75_v18 = vsub.f32 1.0, %v74_v17 }
  0xa2   :  { %v76_v19 = vmul.f32 %v668_v16, %v75_v18 }
  0xa4   :  { %v77_v20 = vadd.f32 %v668_v16, %v76_v19 }
  0xa6   :  { %v81_v23 = vsel %vm80_vm3, %v668_v16, %v77_v20 }
  0xa7   :  { %v86_v26 = vsel %vm83_vm4, %v85_v24, %v81_v23 }
 0x105   :  { %v96_v25 = vpop.permute.xlu0 %95 }
 0x106   :  { %v98_v27 = vmul.f32 %v96_v25, %v86_v26 }
 0x108   :  { %100 = vrot.lane.b32.xlu1 %v98_v27, %s727_s29 }
 0x10d   :  { %v91_v28 = vpop.permute.xlu0 %90 }
 0x10e   :  { %v93_v29 = vmul.f32 %v91_v28, %v86_v26 }
 0x17a   :  { %v101_v30 = vpop.permute.xlu1 %100 }
 0x17b   :  { %v103_v31 = vadd.f32 %v101_v30, %v93_v29 }
 0x17d   :  { %669 = vtanh.f32 %v103_v31 }
 0x183   :  { %v670_v32 = vpop.eup %669 }
 0x184   :  { %106 = vrot.lane.b32.xlu1 %v670_v32, %s727_s29 }
 0x1f6   :  { %v107_v33 = vpop.permute.xlu1 %106 }
 0x1f7   :  { %v109_v34 = vmul.f32 %v107_v33, %v86_v26 }
 0x1f9   :  { %v787_v35 = vpack.c.bf16 %v109_v34, %v109_v34 }
 0x1fb   :  { %v120_v36 = vunpack.c.l.b16 %v787_v35 }
 0x1fd   :  { %v121_v37 = vpack.c.b16 %v120_v36, %v120_v36 }
 0x1ff   :  { %122 = vrot.lane.b32.xlu2 %v121_v37, %s728_s3  ;;  %v638_v37 = vld [vmem:[%s912_s0 + $0xc] sm:$0xff]  }
 0x259   :  { %v123_v38 = vpop.permute.xlu2 %122 }
 0x25a   :  { %631 = vmatmul.msk.bf16.vlgmr.msra.gmra.mxu1 %vm26_vm0, %v123_v38  ;;  %v255_v38 = vunpack.c.l.bf16 %v638_v37 }
 0x2d7   :  { %v136_v41 = vpop.f32.mrf.mxu1 }
 0x2d8   :  { %v140_v42 = vadd.f32 %v136_v41, %v119_v40 }
 0x2da   :  { %671 = vtanh.f32 %v140_v42  ;;  %v632_v45 = vmul.f32 -1.442695, %v140_v42 }
 0x2dc   :  { %673 = vpow2.f32 %v632_v45 }
 0x2df   :  { %v138_v43 = vpop.f32.mrf.mxu1 }
 0x2e0   :  { %v672_v44 = vpop.eup %671 }
 0x2e1   :  { %163 = vrot.lane.b32.xlu2 %v672_v44, %s727_s29 }
 0x2e2   :  { %v674_v46 = vpop.eup %673 }
 0x2e3   :  { %v144_v47 = vadd.f32 1.0, %v674_v46 }
 0x2e5   :  { %675 = vrcp.f32 %v144_v47  ;;  %v156_v53 = vand.u32 2147483648, %v144_v47  ;;  %vm150_vm6 = vweird.f32 %v144_v47  ;;  %v154_v54 = vand.u32 2147483647, %v144_v47 }
 0x2e7   :  { %v157_v56 = vor.u32 1.1754944e-38, %v156_v53  ;;  %vm155_vm8 = vcmp.eq.f32.partialorder %v154_v54, 8.507059e+37 }
 0x2eb   :  { %v676_v48 = vpop.eup %675 }
 0x2ec   :  { %v146_v49 = vmul.f32 %v676_v48, %v144_v47  ;;  %vm151_vm5 = vweird.f32 %v676_v48 }
 0x2ed   :  { %vm152_vm7 = vmor %vm150_vm6, %vm151_vm5 }
 0x2ee   :  { %v147_v50 = vsub.f32 1.0, %v146_v49 }
 0x2f0   :  { %v148_v51 = vmul.f32 %v676_v48, %v147_v50 }
 0x2f2   :  { %v149_v52 = vadd.f32 %v676_v48, %v148_v51 }
 0x2f4   :  { %v153_v55 = vsel %vm152_vm7, %v676_v48, %v149_v52 }
 0x2f5   :  { %v158_v58 = vsel %vm155_vm8, %v157_v56, %v153_v55 }
 0x2f6   :  { %v161_v60 = vmul.f32 %v158_v58, %v103_v31 }
 0x33b   :  { %v164_v57 = vpop.permute.xlu2 %163 }
 0x33c   :  { %v166_v59 = vmul.f32 %v164_v57, %v158_v58 }
 0x33e   :  { %168 = vrot.lane.b32.xlu0 %v166_v59, %s727_s29 }
 0x3b0   :  { %v169_v61 = vpop.permute.xlu0 %168 }
 0x3b1   :  { %v171_v62 = vadd.f32 %v169_v61, %v161_v60 }
 0x3b3   :  { %677 = vtanh.f32 %v171_v62 }
 0x3b9   :  { %v678_v63 = vpop.eup %677 }
 0x3ba   :  { %174 = vrot.lane.b32.xlu1 %v678_v63, %s727_s29 }
 0x42c   :  { %v175_v0 = vpop.permute.xlu1 %174 }
 0x42d   :  { %v177_v1 = vmul.f32 %v175_v0, %v158_v58 }
 0x42f   :  { %v798_v2 = vpack.c.bf16 %v177_v1, %v177_v1 }
 0x431   :  { %v188_v3 = vunpack.c.l.b16 %v798_v2 }
 0x433   :  { %v189_v4 = vpack.c.b16 %v188_v3, %v188_v3 }
 0x435   :  { %190 = vrot.lane.b32.xlu2 %v189_v4, %s728_s3 }
 0x48f   :  { %v191_v5 = vpop.permute.xlu2 %190 }
 0x490   :  { %635 = vmatmul.msk.bf16.vlgmr.msra.gmra.mxu2 %vm26_vm0, %v191_v5  ;;  %v323_v5 = vunpack.c.h.bf16 %v638_v37  ;;  %v646_v37 = vld [vmem:[%s912_s0 + $0x14] sm:$0xff]  }
 0x513   :  { %v204_v7 = vpop.f32.mrf.mxu2 }
 0x514   :  { %v208_v8 = vadd.f32 %v204_v7, %v187_v6 }
 0x516   :  { %679 = vtanh.f32 %v208_v8  ;;  %v636_v11 = vmul.f32 -1.442695, %v208_v8 }
 0x518   :  { %681 = vpow2.f32 %v636_v11 }
 0x51b   :  { %v206_v9 = vpop.f32.mrf.mxu2 }
 0x51c   :  { %v680_v10 = vpop.eup %679 }
 0x51d   :  { %231 = vrot.lane.b32.xlu0 %v680_v10, %s727_s29 }
 0x51e   :  { %v682_v12 = vpop.eup %681 }
 0x51f   :  { %v212_v13 = vadd.f32 1.0, %v682_v12 }
 0x521   :  { %683 = vrcp.f32 %v212_v13  ;;  %v224_v19 = vand.u32 2147483648, %v212_v13  ;;  %vm218_vm10 = vweird.f32 %v212_v13  ;;  %v222_v20 = vand.u32 2147483647, %v212_v13 }
 0x523   :  { %v225_v22 = vor.u32 1.1754944e-38, %v224_v19  ;;  %vm223_vm12 = vcmp.eq.f32.partialorder %v222_v20, 8.507059e+37 }
 0x527   :  { %v684_v14 = vpop.eup %683 }
 0x528   :  { %v214_v15 = vmul.f32 %v684_v14, %v212_v13  ;;  %vm219_vm9 = vweird.f32 %v684_v14 }
 0x529   :  { %vm220_vm11 = vmor %vm218_vm10, %vm219_vm9 }
 0x52a   :  { %v215_v16 = vsub.f32 1.0, %v214_v15 }
 0x52c   :  { %v216_v17 = vmul.f32 %v684_v14, %v215_v16 }
 0x52e   :  { %v217_v18 = vadd.f32 %v684_v14, %v216_v17 }
 0x530   :  { %v221_v21 = vsel %vm220_vm11, %v684_v14, %v217_v18 }
 0x531   :  { %v226_v24 = vsel %vm223_vm12, %v225_v22, %v221_v21 }
 0x532   :  { %v229_v26 = vmul.f32 %v226_v24, %v171_v62 }
 0x58f   :  { %v232_v23 = vpop.permute.xlu0 %231 }
 0x590   :  { %v234_v25 = vmul.f32 %v232_v23, %v226_v24 }
 0x592   :  { %236 = vrot.lane.b32.xlu1 %v234_v25, %s727_s29 }
 0x604   :  { %v237_v27 = vpop.permute.xlu1 %236 }
 0x605   :  { %v239_v28 = vadd.f32 %v237_v27, %v229_v26 }
 0x607   :  { %685 = vtanh.f32 %v239_v28 }
 0x60d   :  { %v686_v29 = vpop.eup %685 }
 0x60e   :  { %242 = vrot.lane.b32.xlu2 %v686_v29, %s727_s29 }
 0x668   :  { %v243_v30 = vpop.permute.xlu2 %242 }
 0x669   :  { %v245_v31 = vmul.f32 %v243_v30, %v226_v24 }
 0x66b   :  { %v806_v32 = vpack.c.bf16 %v245_v31, %v245_v31 }
 0x66d   :  { %v256_v33 = vunpack.c.l.b16 %v806_v32 }
 0x66f   :  { %v257_v34 = vpack.c.b16 %v256_v33, %v256_v33 }
 0x671   :  { %258 = vrot.lane.b32.xlu0 %v257_v34, %s728_s3 }
 0x6e3   :  { %v259_v36 = vpop.permute.xlu0 %258 }
 0x6e4   :  { %639 = vmatmul.msk.bf16.vlgmr.msra.gmra.mxu3 %vm26_vm0, %v259_v36 }
 0x767   :  { %v272_v39 = vpop.f32.mrf.mxu3 }
 0x768   :  { %v276_v40 = vadd.f32 %v272_v39, %v255_v38  ;;  %v391_v38 = vunpack.c.l.bf16 %v646_v37 }
 0x76a   :  { %687 = vtanh.f32 %v276_v40  ;;  %v640_v43 = vmul.f32 -1.442695, %v276_v40 }
 0x76c   :  { %689 = vpow2.f32 %v640_v43 }
 0x76f   :  { %v274_v41 = vpop.f32.mrf.mxu3 }
 0x770   :  { %v688_v42 = vpop.eup %687 }
 0x771   :  { %299 = vrot.lane.b32.xlu1 %v688_v42, %s727_s29 }
 0x772   :  { %v690_v44 = vpop.eup %689 }
 0x773   :  { %v280_v45 = vadd.f32 1.0, %v690_v44 }
 0x775   :  { %691 = vrcp.f32 %v280_v45  ;;  %v292_v51 = vand.u32 2147483648, %v280_v45  ;;  %vm286_vm14 = vweird.f32 %v280_v45  ;;  %v290_v52 = vand.u32 2147483647, %v280_v45 }
 0x777   :  { %v293_v54 = vor.u32 1.1754944e-38, %v292_v51  ;;  %vm291_vm1 = vcmp.eq.f32.partialorder %v290_v52, 8.507059e+37 }
 0x77b   :  { %v692_v46 = vpop.eup %691 }
 0x77c   :  { %v282_v47 = vmul.f32 %v692_v46, %v280_v45  ;;  %vm287_vm13 = vweird.f32 %v692_v46 }
 0x77d   :  { %vm288_vm15 = vmor %vm286_vm14, %vm287_vm13 }
 0x77e   :  { %v283_v48 = vsub.f32 1.0, %v282_v47 }
 0x780   :  { %v284_v49 = vmul.f32 %v692_v46, %v283_v48 }
 0x782   :  { %v285_v50 = vadd.f32 %v692_v46, %v284_v49 }
 0x784   :  { %v289_v53 = vsel %vm288_vm15, %v692_v46, %v285_v50 }
 0x785   :  { %v294_v56 = vsel %vm291_vm1, %v293_v54, %v289_v53 }
 0x786   :  { %v297_v58 = vmul.f32 %v294_v56, %v239_v28 }
 0x7e3   :  { %v300_v55 = vpop.permute.xlu1 %299 }
 0x7e4   :  { %v302_v57 = vmul.f32 %v300_v55, %v294_v56 }
 0x7e6   :  { %304 = vrot.lane.b32.xlu2 %v302_v57, %s727_s29 }
 0x840   :  { %v305_v59 = vpop.permute.xlu2 %304 }
 0x841   :  { %v307_v60 = vadd.f32 %v305_v59, %v297_v58 }
 0x843   :  { %693 = vtanh.f32 %v307_v60 }
 0x849   :  { %v694_v61 = vpop.eup %693 }
 0x84a   :  { %310 = vrot.lane.b32.xlu0 %v694_v61, %s727_s29 }
 0x8bc   :  { %v311_v62 = vpop.permute.xlu0 %310 }
 0x8bd   :  { %v313_v63 = vmul.f32 %v311_v62, %v294_v56 }
 0x8bf   :  { %v817_v0 = vpack.c.bf16 %v313_v63, %v313_v63 }
 0x8c1   :  { %v324_v1 = vunpack.c.l.b16 %v817_v0 }
 0x8c3   :  { %v325_v3 = vpack.c.b16 %v324_v1, %v324_v1 }
 0x8c5   :  { %326 = vrot.lane.b32.xlu1 %v325_v3, %s728_s3 }
 0x937   :  { %v327_v4 = vpop.permute.xlu1 %326 }
 0x938   :  { %643 = vmatmul.msk.bf16.vlgmr.msrb.gmra.mxu0 %vm26_vm0, %v327_v4 }
 0x9b5   :  { %v340_v6 = vpop.f32.mrf.mxu0 }
 0x9b6   :  { %v344_v7 = vadd.f32 %v340_v6, %v323_v5  ;;  %v459_v6 = vunpack.c.h.bf16 %v646_v37 }
 0x9b8   :  { %695 = vtanh.f32 %v344_v7  ;;  %v644_v10 = vmul.f32 -1.442695, %v344_v7 }
 0x9ba   :  { %697 = vpow2.f32 %v644_v10 }
 0x9bd   :  { %v342_v8 = vpop.f32.mrf.mxu0 }
 0x9be   :  { %v696_v9 = vpop.eup %695 }
 0x9bf   :  { %367 = vrot.lane.b32.xlu2 %v696_v9, %s727_s29 }
 0x9c0   :  { %v698_v11 = vpop.eup %697 }
 0x9c1   :  { %v348_v12 = vadd.f32 1.0, %v698_v11 }
 0x9c3   :  { %699 = vrcp.f32 %v348_v12  ;;  %v360_v18 = vand.u32 2147483648, %v348_v12  ;;  %vm354_vm3 = vweird.f32 %v348_v12  ;;  %v358_v19 = vand.u32 2147483647, %v348_v12 }
 0x9c5   :  { %v361_v21 = vor.u32 1.1754944e-38, %v360_v18  ;;  %vm359_vm5 = vcmp.eq.f32.partialorder %v358_v19, 8.507059e+37 }
 0x9c9   :  { %v700_v13 = vpop.eup %699 }
 0x9ca   :  { %v350_v14 = vmul.f32 %v700_v13, %v348_v12  ;;  %vm355_vm2 = vweird.f32 %v700_v13 }
 0x9cb   :  { %vm356_vm4 = vmor %vm354_vm3, %vm355_vm2  ;;  %vm115_vm3 = vcmask 257024  }
 0x9cc   :  { %v351_v15 = vsub.f32 1.0, %v350_v14 }
 0x9ce   :  { %v352_v16 = vmul.f32 %v700_v13, %v351_v15 }
 0x9d0   :  { %v353_v17 = vadd.f32 %v700_v13, %v352_v16 }
 0x9d2   :  { %v357_v20 = vsel %vm356_vm4, %v700_v13, %v353_v17 }
 0x9d3   :  { %v362_v23 = vsel %vm359_vm5, %v361_v21, %v357_v20 }
 0x9d4   :  { %v365_v25 = vmul.f32 %v362_v23, %v307_v60 }
 0xa19   :  { %v368_v22 = vpop.permute.xlu2 %367 }
 0xa1a   :  { %v370_v24 = vmul.f32 %v368_v22, %v362_v23 }
 0xa1c   :  { %372 = vrot.lane.b32.xlu0 %v370_v24, %s727_s29 }
 0xa8e   :  { %v373_v26 = vpop.permute.xlu0 %372 }
 0xa8f   :  { %v375_v27 = vadd.f32 %v373_v26, %v365_v25 }
 0xa91   :  { %701 = vtanh.f32 %v375_v27 }
 0xa97   :  { %v702_v28 = vpop.eup %701 }
 0xa98   :  { %378 = vrot.lane.b32.xlu1 %v702_v28, %s727_s29 }
 0xb0a   :  { %v379_v29 = vpop.permute.xlu1 %378 }
 0xb0b   :  { %v381_v30 = vmul.f32 %v379_v29, %v362_v23 }
 0xb0d   :  { %v825_v31 = vpack.c.bf16 %v381_v30, %v381_v30 }
 0xb0f   :  { %v392_v33 = vunpack.c.l.b16 %v825_v31 }
 0xb11   :  { %v393_v34 = vpack.c.b16 %v392_v33, %v392_v33 }
 0xb13   :  { %394 = vrot.lane.b32.xlu2 %v393_v34, %s728_s3 }
 0xb6d   :  { %v395_v36 = vpop.permute.xlu2 %394 }
 0xb6e   :  { %647 = vmatmul.msk.bf16.vlgmr.msrb.gmra.mxu1 %vm26_vm0, %v395_v36 }
 0xbeb   :  { %v408_v39 = vpop.f32.mrf.mxu1 }
 0xbec   :  { %v412_v40 = vadd.f32 %v408_v39, %v391_v38  ;;  %v654_v39 = vld [vmem:[%s912_s0 + $0x1c] sm:$0xf] }
 0xbee   :  { %703 = vtanh.f32 %v412_v40  ;;  %v648_v43 = vmul.f32 -1.442695, %v412_v40  ;;  %v527_v40 = vunpack.c.l.bf16 %v654_v39 }
 0xbf0   :  { %705 = vpow2.f32 %v648_v43 }
 0xbf3   :  { %v410_v41 = vpop.f32.mrf.mxu1 }
 0xbf4   :  { %v704_v42 = vpop.eup %703 }
 0xbf5   :  { %435 = vrot.lane.b32.xlu0 %v704_v42, %s727_s29 }
 0xbf6   :  { %v706_v44 = vpop.eup %705 }
 0xbf7   :  { %v416_v45 = vadd.f32 1.0, %v706_v44 }
 0xbf9   :  { %707 = vrcp.f32 %v416_v45  ;;  %v428_v51 = vand.u32 2147483648, %v416_v45  ;;  %vm422_vm7 = vweird.f32 %v416_v45  ;;  %v426_v52 = vand.u32 2147483647, %v416_v45 }
 0xbfb   :  { %v429_v54 = vor.u32 1.1754944e-38, %v428_v51  ;;  %vm427_vm9 = vcmp.eq.f32.partialorder %v426_v52, 8.507059e+37 }
 0xbff   :  { %v708_v46 = vpop.eup %707 }
 0xc00   :  { %v418_v47 = vmul.f32 %v708_v46, %v416_v45  ;;  %vm423_vm6 = vweird.f32 %v708_v46 }
 0xc01   :  { %vm424_vm8 = vmor %vm422_vm7, %vm423_vm6 }
 0xc02   :  { %v419_v48 = vsub.f32 1.0, %v418_v47 }
 0xc04   :  { %v420_v49 = vmul.f32 %v708_v46, %v419_v48 }
 0xc06   :  { %v421_v50 = vadd.f32 %v708_v46, %v420_v49 }
 0xc08   :  { %v425_v53 = vsel %vm424_vm8, %v708_v46, %v421_v50 }
 0xc09   :  { %v430_v56 = vsel %vm427_vm9, %v429_v54, %v425_v53 }
 0xc0a   :  { %v433_v58 = vmul.f32 %v430_v56, %v375_v27 }
 0xc67   :  { %v436_v55 = vpop.permute.xlu0 %435 }
 0xc68   :  { %v438_v57 = vmul.f32 %v436_v55, %v430_v56 }
 0xc6a   :  { %440 = vrot.lane.b32.xlu1 %v438_v57, %s727_s29 }
 0xcdc   :  { %v441_v59 = vpop.permute.xlu1 %440 }
 0xcdd   :  { %v443_v60 = vadd.f32 %v441_v59, %v433_v58 }
 0xcdf   :  { %709 = vtanh.f32 %v443_v60 }
 0xce5   :  { %v710_v61 = vpop.eup %709 }
 0xce6   :  { %446 = vrot.lane.b32.xlu2 %v710_v61, %s727_s29 }
 0xd40   :  { %v447_v62 = vpop.permute.xlu2 %446 }
 0xd41   :  { %v449_v63 = vmul.f32 %v447_v62, %v430_v56 }
 0xd43   :  { %v836_v1 = vpack.c.bf16 %v449_v63, %v449_v63 }
 0xd45   :  { %v460_v3 = vunpack.c.l.b16 %v836_v1 }
 0xd47   :  { %v461_v4 = vpack.c.b16 %v460_v3, %v460_v3 }
 0xd49   :  { %462 = vrot.lane.b32.xlu0 %v461_v4, %s728_s3 }
 0xdbb   :  { %v463_v5 = vpop.permute.xlu0 %462 }
 0xdbc   :  { %651 = vmatmul.msk.bf16.vlgmr.msrb.gmra.mxu2 %vm26_vm0, %v463_v5 }
 0xe3f   :  { %v476_v7 = vpop.f32.mrf.mxu2 }
 0xe40   :  { %v480_v8 = vadd.f32 %v476_v7, %v459_v6 }
 0xe42   :  { %711 = vtanh.f32 %v480_v8  ;;  %v652_v11 = vmul.f32 -1.442695, %v480_v8 }
 0xe44   :  { %713 = vpow2.f32 %v652_v11 }
 0xe47   :  { %v478_v9 = vpop.f32.mrf.mxu2 }
 0xe48   :  { %v712_v10 = vpop.eup %711 }
 0xe49   :  { %503 = vrot.lane.b32.xlu1 %v712_v10, %s727_s29 }
 0xe4a   :  { %v714_v12 = vpop.eup %713 }
 0xe4b   :  { %v484_v13 = vadd.f32 1.0, %v714_v12 }
 0xe4d   :  { %715 = vrcp.f32 %v484_v13  ;;  %v496_v19 = vand.u32 2147483648, %v484_v13  ;;  %vm490_vm11 = vweird.f32 %v484_v13  ;;  %v494_v20 = vand.u32 2147483647, %v484_v13 }
 0xe4f   :  { %v497_v22 = vor.u32 1.1754944e-38, %v496_v19  ;;  %vm495_vm13 = vcmp.eq.f32.partialorder %v494_v20, 8.507059e+37 }
 0xe53   :  { %v716_v14 = vpop.eup %715 }
 0xe54   :  { %v486_v15 = vmul.f32 %v716_v14, %v484_v13  ;;  %vm491_vm10 = vweird.f32 %v716_v14 }
 0xe55   :  { %vm492_vm12 = vmor %vm490_vm11, %vm491_vm10 }
 0xe56   :  { %v487_v16 = vsub.f32 1.0, %v486_v15 }
 0xe58   :  { %v488_v17 = vmul.f32 %v716_v14, %v487_v16 }
 0xe5a   :  { %v489_v18 = vadd.f32 %v716_v14, %v488_v17 }
 0xe5c   :  { %v493_v21 = vsel %vm492_vm12, %v716_v14, %v489_v18 }
 0xe5d   :  { %v498_v24 = vsel %vm495_vm13, %v497_v22, %v493_v21 }
 0xe5e   :  { %v501_v26 = vmul.f32 %v498_v24, %v443_v60 }
 0xebb   :  { %v504_v23 = vpop.permute.xlu1 %503 }
 0xebc   :  { %v506_v25 = vmul.f32 %v504_v23, %v498_v24 }
 0xebe   :  { %508 = vrot.lane.b32.xlu2 %v506_v25, %s727_s29 }
 0xf18   :  { %v509_v27 = vpop.permute.xlu2 %508 }
 0xf19   :  { %v511_v28 = vadd.f32 %v509_v27, %v501_v26 }
 0xf1b   :  { %717 = vtanh.f32 %v511_v28 }
 0xf21   :  { %v718_v29 = vpop.eup %717 }
 0xf22   :  { %514 = vrot.lane.b32.xlu0 %v718_v29, %s727_s29 }
 0xf94   :  { %v515_v30 = vpop.permute.xlu0 %514 }
 0xf95   :  { %v517_v33 = vmul.f32 %v515_v30, %v498_v24 }
 0xf97   :  { %v518_v34 = vpack.c.bf16 %v517_v33, %v517_v33 }
 0xf99   :  { %v528_v36 = vunpack.c.l.b16 %v518_v34 }
 0xf9b   :  { %v529_v37 = vpack.c.b16 %v528_v36, %v528_v36 }
 0xf9d   :  { %530 = vrot.lane.b32.xlu1 %v529_v37, %s728_s3 }
0x100f   :  { %v531_v38 = vpop.permute.xlu1 %530 }
0x1010   :  { %655 = vmatmul.msk.bf16.vlgmr.msrb.gmra.mxu3 %vm26_vm0, %v531_v38 }
0x1093   :  { %v544_v41 = vpop.f32.mrf.mxu3 }
0x1094   :  { %v548_v42 = vadd.f32 %v544_v41, %v527_v40 }
0x1096   :  { %719 = vtanh.f32 %v548_v42  ;;  %v656_v45 = vmul.f32 -1.442695, %v548_v42 }
0x1098   :  { %721 = vpow2.f32 %v656_v45 }
0x109b   :  { %v546_v43 = vpop.f32.mrf.mxu3 }
0x109c   :  { %v720_v44 = vpop.eup %719 }
0x109d   :  { %571 = vrot.lane.b32.xlu2 %v720_v44, %s727_s29 }
0x109e   :  { %v722_v46 = vpop.eup %721 }
0x109f   :  { %v552_v47 = vadd.f32 1.0, %v722_v46 }
0x10a1   :  { %723 = vrcp.f32 %v552_v47  ;;  %v564_v53 = vand.u32 2147483648, %v552_v47  ;;  %vm558_vm15 = vweird.f32 %v552_v47  ;;  %v562_v54 = vand.u32 2147483647, %v552_v47 }
0x10a3   :  { %v565_v55 = vor.u32 1.1754944e-38, %v564_v53  ;;  %vm563_vm2 = vcmp.eq.f32.partialorder %v562_v54, 8.507059e+37 }
0x10a5   :  { %112 = vrot.lane.b32.xlu2 %v787_v35, %s728_s3 }
0x10a7   :  { %v724_v48 = vpop.eup %723 }
0x10a8   :  { %v554_v49 = vmul.f32 %v724_v48, %v552_v47  ;;  %vm559_vm14 = vweird.f32 %v724_v48 }
0x10a9   :  { %vm560_vm1 = vmor %vm558_vm15, %vm559_vm14 }
0x10aa   :  { %v555_v50 = vsub.f32 1.0, %v554_v49 }
0x10ac   :  { %v556_v51 = vmul.f32 %v724_v48, %v555_v50 }
0x10ad   :  { %316 = vrot.lane.b32.xlu2 %v817_v0, %s728_s3 }
0x10ae   :  { %v557_v52 = vadd.f32 %v724_v48, %v556_v51 }
0x10b0   :  { %v561_v35 = vsel %vm560_vm1, %v724_v48, %v557_v52 }
0x10b1   :  { %v566_v56 = vsel %vm563_vm2, %v565_v55, %v561_v35 }
0x10b2   :  { %v569_v61 = vmul.f32 %v566_v56, %v511_v28 }
0x10b5   :  { %520 = vrot.lane.b32.xlu2 %v518_v34, %s728_s3 }
0x10f7   :  { %v572_v0 = vpop.permute.xlu2 %571 }
0x10f8   :  { %v574_v57 = vmul.f32 %v572_v0, %v566_v56 }
0x10fa   :  { %576 = vrot.lane.b32.xlu0 %v574_v57, %s727_s29 }
0x10ff   :  { %v113_v58 = vpop.permute.xlu2 %112 }
0x1100   :  { %116 = vst.msk [vmem:[%s913_s4] sm:$0xf] %vm115_vm3, %v113_v58 }
0x1102   :  { %180 = vrot.lane.b32.xlu0 %v798_v2, %s728_s3 }
0x1107   :  { %v317_v59 = vpop.permute.xlu2 %316 }
0x1108   :  { %641 = vst.msk [vmem:[%s913_s4 + $0xc] sm:$0xf] %vm115_vm3, %v317_v59 }
0x110a   :  { %384 = vrot.lane.b32.xlu0 %v825_v31, %s728_s3 }
0x110f   :  { %v521_v60 = vpop.permute.xlu2 %520 }
0x1110   :  { %653 = vst.msk [vmem:[%s913_s4 + $0x18] sm:$0xf] %vm115_vm3, %v521_v60 }
0x116c   :  { %v577_v62 = vpop.permute.xlu0 %576 }
0x116d   :  { %v579_v63 = vadd.f32 %v577_v62, %v569_v61 }
0x116f   :  { %725 = vtanh.f32 %v579_v63  ;;  %599 = vrot.lane.b32.xlu2 %v579_v63, %s729_s19 }
0x1174   :  { %v181_v2 = vpop.permute.xlu0 %180 }
0x1175   :  { %v726_v3 = vpop.eup %725  ;;  %633 = vst.msk [vmem:[%s913_s4 + $0x4] sm:$0xf] %vm115_vm3, %v181_v2 }
0x1176   :  { %582 = vrot.lane.b32.xlu1 %v726_v3, %s727_s29 }
0x117c   :  { %v385_v31 = vpop.permute.xlu0 %384 }
0x117d   :  { %645 = vst.msk [vmem:[%s913_s4 + $0x10] sm:$0xf] %vm115_vm3, %v385_v31 }
0x117e   :  { %248 = vrot.lane.b32.xlu1 %v806_v32, %s728_s3 }
0x1186   :  { %452 = vrot.lane.b32.xlu1 %v836_v1, %s728_s3 }
0x11c9   :  { %v600_v4 = vpop.permute.xlu2 %599 }
0x11ca   :  { %602 = vst.msk [vmem:[#allocation3] sm:$0xff] %vm26_vm0, %v600_v4 }
0x11cb   :  { %607 = vst.msk [vmem:[%s914_s6] sm:$0xff] %vm26_vm0, %v600_v4 }
0x11e8   :  { %v583_v5 = vpop.permute.xlu1 %582 }
0x11e9   :  { %v585_v6 = vmul.f32 %v583_v5, %v566_v56 }
0x11eb   :  { %v586_v7 = vpack.c.bf16 %v585_v6, %v585_v6  ;;  %594 = vrot.lane.b32.xlu1 %v585_v6, %s728_s3 }
0x11ed   :  { %588 = vrot.lane.b32.xlu0 %v586_v7, %s728_s3 }
0x11f0   :  { %v249_v8 = vpop.permute.xlu1 %248 }
0x11f1   :  { %637 = vst.msk [vmem:[%s913_s4 + $0x8] sm:$0xf] %vm115_vm3, %v249_v8 }
0x11f8   :  { %v453_v32 = vpop.permute.xlu1 %452 }
0x11f9   :  { %649 = vst.msk [vmem:[%s913_s4 + $0x14] sm:$0xf] %vm115_vm3, %v453_v32 }
0x125d   :  { %v595_v1 = vpop.permute.xlu1 %594 }
0x125e   :  { %597 = vst.msk [vmem:[#allocation2] sm:$0xff] %vm26_vm0, %v595_v1 }
0x125f   :  { %606 = vst.msk [vmem:[%s915_s5] sm:$0xff] %vm26_vm0, %v595_v1  ;;  %v589_v9 = vpop.permute.xlu0 %588 }
0x1260   :  { %657 = vst.msk [vmem:[%s913_s4 + $0x1c] sm:$0xf] %vm115_vm3, %v589_v9 }

</bundles_post_ra>
